<compile_context>
chip_gen: v7x
topology: tpu7x:2x2x1
jax: 0.10.0
libtpu: 0.0.40
codegen_flags: <defaults>
</compile_context>

<pallas_src>
import jax
import jax.numpy as jnp
from jax.experimental import pallas as pl
from jax.experimental.pallas import tpu as pltpu


# ----------------------------- model hyperparams -----------------------------
B = 2                     # batch
S = 8                     # sequence length
E = 32                    # embedding_dim
H = 16                    # bidirectional_units  -> 2H = 32
CONV_FILTERS = (32, 32)   # conv_filters; 32 + 32 = 64 matches nn.Linear(64, output_dim)
K1, K2 = 4, 5             # conv kernel sizes
OUT_DIM = 2               # output_dim
OUT_PAD = 128             # lane-dense padded output width
VOCAB = 100

TILE_B = 8                # batch tile per grid step (sublane-aligned)


# --------------------------------- kernel ------------------------------------
def bcnn_kernel(enc_ref,                     # (S, TILE_B, E) time-major batch tile
                wih_f_ref, whh_f_ref, bf_ref,   # (E, 4H), (H, 4H), (1, 4H)
                wih_b_ref, whh_b_ref, bb_ref,   # (E, 4H), (H, 4H), (1, 4H)
                w1_ref, b1_ref,              # (K1*2H, F1), (1, F1)
                w2_ref, b2_ref,              # (K2*2H, F2), (1, F2)
                wfc_ref, bfc_ref,            # (64, OUT_PAD), (1, OUT_PAD)
                out_ref):                    # (TILE_B, OUT_PAD)
    enc2d = enc_ref[...].reshape(S * TILE_B, E)          # time-major rows: t*TILE_B + b

    # ---- hoisted input-to-hidden projections (one matmul per direction) ----
    gates_ih_f = (jnp.dot(enc2d, wih_f_ref[...], preferred_element_type=jnp.float32)
                  + bf_ref[...])                          # (S*TILE_B, 4H)
    gates_ih_b = (jnp.dot(enc2d, wih_b_ref[...], preferred_element_type=jnp.float32)
                  + bb_ref[...])                          # (S*TILE_B, 4H)

    def run_lstm(gates_ih, whh_t, reverse):
        # gates_ih: precomputed x@Wih^T + b, time-major.  whh_t: (H, 4H).
        h = jnp.zeros((TILE_B, H), jnp.float32)
        c = jnp.zeros((TILE_B, H), jnp.float32)
        outs = [None] * S
        order = range(S - 1, -1, -1) if reverse else range(S)
        for t in order:                                   # static unroll (S small & static)
            g = (gates_ih[t * TILE_B:(t + 1) * TILE_B, :]
                 + jnp.dot(h, whh_t, preferred_element_type=jnp.float32))  # (TILE_B, 4H)
            i = jax.nn.sigmoid(g[:, 0 * H:1 * H])         # PyTorch gate order i, f, g, o
            f = jax.nn.sigmoid(g[:, 1 * H:2 * H])
            gg = jnp.tanh(g[:, 2 * H:3 * H])
            o = jax.nn.sigmoid(g[:, 3 * H:4 * H])
            c = f * c + i * gg
            h = o * jnp.tanh(c)
            outs[t] = h
        return outs

    outs_f = run_lstm(gates_ih_f, whh_f_ref[...], reverse=False)
    outs_b = run_lstm(gates_ih_b, whh_b_ref[...], reverse=True)

    # ---- BiLSTM output slab built once: (S*TILE_B, 2H), time-major ----
    fwd = jnp.concatenate(outs_f, axis=0)                 # (S*TILE_B, H)
    bwd = jnp.concatenate(outs_b, axis=0)                 # (S*TILE_B, H)
    bi = jnp.concatenate([fwd, bwd], axis=1)              # (S*TILE_B, 2H)

    def conv_relu_maxpool(w, b, ksize):
        # w: (K*2H, F) fused-tap weight; im2col matrix from K sublane-aligned slices of bi.
        f_out = w.shape[1]
        l_out = S - ksize + 1
        x = jnp.concatenate(
            [bi[k * TILE_B:(k + l_out) * TILE_B, :] for k in range(ksize)],
            axis=1)                                       # (L_out*TILE_B, K*2H)
        y = jnp.maximum(jnp.dot(x, w, preferred_element_type=jnp.float32) + b, 0.0)
        y = y.reshape(l_out, TILE_B, f_out)
        return jnp.max(y, axis=0)                         # global max-pool over time: (TILE_B, F)

    p1 = conv_relu_maxpool(w1_ref[...], b1_ref[...], K1)  # (TILE_B, F0)
    p2 = conv_relu_maxpool(w2_ref[...], b2_ref[...], K2)  # (TILE_B, F1)
    cat = jnp.concatenate([p1, p2], axis=1)               # (TILE_B, 64)

    # Dropout -> identity (inference).  Lane-dense padded FC output.
    out_ref[...] = (jnp.dot(cat, wfc_ref[...], preferred_element_type=jnp.float32)
                    + bfc_ref[...])


# -------------------------------- wrapper -------------------------------------
def _prep_params(net_params):
    """Wrapper-side layout plumbing: transposes, bias fusion, im2col weight reshape, FC pad."""
    (wih_f, whh_f, bih_f, bhh_f,
     wih_b, whh_b, bih_b, bhh_b,
     w1, b1, w2, b2, wfc, bfc) = net_params

    wih_f_t, whh_f_t, bf = wih_f.T, whh_f.T, bih_f + bhh_f     # (E,4H), (H,4H), (1,4H)
    wih_b_t, whh_b_t, bb = wih_b.T, whh_b.T, bih_b + bhh_b

    # Conv1d weight (F, 2H, K) -> (K, 2H, F) -> (K*2H, F) fused-tap matmul weight.
    w1_re = jnp.transpose(w1, (2, 1, 0)).reshape(K1 * 2 * H, CONV_FILTERS[0])
    w2_re = jnp.transpose(w2, (2, 1, 0)).reshape(K2 * 2 * H, CONV_FILTERS[1])

    # FC weight (OUT_DIM, 64) -> (64, OUT_PAD) zero-padded for a lane-dense output store.
    wfc_pad = jnp.zeros((CONV_FILTERS[0] + CONV_FILTERS[1], OUT_PAD), jnp.float32)
    wfc_pad = wfc_pad.at[:, :OUT_DIM].set(wfc.T)
    bfc_pad = jnp.zeros((1, OUT_PAD), jnp.float32).at[:, :OUT_DIM].set(bfc)

    return (wih_f_t, whh_f_t, bf,
            wih_b_t, whh_b_t, bb,
            w1_re, b1, w2_re, b2,
            wfc_pad, bfc_pad)


def bcnn_forward(encoded, net_params):
    b_in, s_in, e_in = encoded.shape
    b_pad = ((b_in + TILE_B - 1) // TILE_B) * TILE_B
    enc = jnp.pad(encoded, ((0, b_pad - b_in), (0, 0), (0, 0)))
    enc_tm = jnp.transpose(enc, (1, 0, 2))                # (S, B_pad, E) time-major

    params = _prep_params(net_params)
    n_tiles = b_pad // TILE_B
    vmem_full = pl.BlockSpec(memory_space=pltpu.MemorySpace.VMEM)   # weights: untiled, resident

    out_padded = pl.pallas_call(
        bcnn_kernel,
        out_shape=jax.ShapeDtypeStruct((b_pad, OUT_PAD), jnp.float32),
        grid=(n_tiles,),
        in_specs=[pl.BlockSpec((s_in, TILE_B, e_in), lambda i: (0, i, 0))]
                 + [vmem_full] * len(params),
        out_specs=pl.BlockSpec((TILE_B, OUT_PAD), lambda i: (i, 0)),
        compiler_params=pltpu.CompilerParams(dimension_semantics=("parallel",)),
    )(enc_tm, *params)
    return out_padded[:b_in, :OUT_DIM]


def init_params(key):
    ks = jax.random.split(key, 16)

    def rnd(k, shape, scale=0.1):
        return (scale * jax.random.normal(k, shape)).astype(jnp.float32)

    # LSTM (PyTorch layout): weight_ih (4H, E), weight_hh (4H, H), biases kept 2D (1, 4H).
    wih_f, whh_f = rnd(ks[0], (4 * H, E)), rnd(ks[1], (4 * H, H))
    bih_f, bhh_f = rnd(ks[2], (1, 4 * H)), rnd(ks[3], (1, 4 * H))
    wih_b, whh_b = rnd(ks[4], (4 * H, E)), rnd(ks[5], (4 * H, H))
    bih_b, bhh_b = rnd(ks[6], (1, 4 * H)), rnd(ks[7], (1, 4 * H))
    # Conv1d: weight (F, C_in=2H, K), bias kept 2D (1, F).
    w1, b1 = rnd(ks[8], (CONV_FILTERS[0], 2 * H, K1)), rnd(ks[9], (1, CONV_FILTERS[0]))
    w2, b2 = rnd(ks[10], (CONV_FILTERS[1], 2 * H, K2)), rnd(ks[11], (1, CONV_FILTERS[1]))
    # Linear(64, output_dim): weight (out, 64), bias kept 2D (1, out).
    wfc = rnd(ks[12], (OUT_DIM, CONV_FILTERS[0] + CONV_FILTERS[1]))
    bfc = rnd(ks[13], (1, OUT_DIM))

    embed_table = rnd(ks[14], (VOCAB, E), scale=0.5)

    net_params = (wih_f, whh_f, bih_f, bhh_f,
                  wih_b, whh_b, bih_b, bhh_b,
                  w1, b1, w2, b2, wfc, bfc)
    return embed_table, net_params


if __name__ == "__main__":
    key = jax.random.PRNGKey(0)
    k_ids, k_params = jax.random.split(key)

    embed_table, net_params = init_params(k_params)

    # Synthetic tokenized batch.
    b_input_ids = jax.random.randint(k_ids, (B, S), 0, VOCAB, dtype=jnp.int32)
    b_input_mask = jnp.ones((B, S), dtype=jnp.float32)

    # TODO(synk): phoBert transformer encoder is external/pretrained; replaced by a deterministic
    # masked embedding lookup producing the (B, S, E) "encoded" tensor the rest consumes.
    encoded = (embed_table[b_input_ids] * b_input_mask[..., None]).astype(jnp.float32)

    logits = bcnn_forward(encoded, net_params)
    jax.block_until_ready(logits)
    assert logits.shape == (B, OUT_DIM) and logits.dtype == jnp.float32
    print("KERNEL_OK")
</pallas_src>

<mosaic_0001>
module attributes {stable_mosaic.version = 11 : i64} {
  func.func @bcnn_kernel(%arg0: i32, %arg1: memref<8x8x32xf32, #tpu.memory_space<vmem>>, %arg2: memref<32x64xf32, #tpu.memory_space<vmem>>, %arg3: memref<16x64xf32, #tpu.memory_space<vmem>>, %arg4: memref<1x64xf32, #tpu.memory_space<vmem>>, %arg5: memref<32x64xf32, #tpu.memory_space<vmem>>, %arg6: memref<16x64xf32, #tpu.memory_space<vmem>>, %arg7: memref<1x64xf32, #tpu.memory_space<vmem>>, %arg8: memref<128x32xf32, #tpu.memory_space<vmem>>, %arg9: memref<1x32xf32, #tpu.memory_space<vmem>>, %arg10: memref<160x32xf32, #tpu.memory_space<vmem>>, %arg11: memref<1x32xf32, #tpu.memory_space<vmem>>, %arg12: memref<64x128xf32, #tpu.memory_space<vmem>>, %arg13: memref<1x128xf32, #tpu.memory_space<vmem>>, %arg14: memref<8x128xf32, #tpu.memory_space<vmem>>) attributes {dimension_semantics = [#tpu.dimension_semantics<parallel>], iteration_bounds = array<i64: 1>, scalar_prefetch = 0 : i64, scratch_operands = 0 : i64, tpu.core_type = #tpu.core_type<tc>, window_params = [{transform_indices = @transform_0, window_bounds = array<i64: 8, 8, 32>}, {pipeline_mode = #tpu.pipeline_mode<synchronous>, transform_indices = @transform_1, window_bounds = array<i64: 32, 64>}, {pipeline_mode = #tpu.pipeline_mode<synchronous>, transform_indices = @transform_2, window_bounds = array<i64: 16, 64>}, {pipeline_mode = #tpu.pipeline_mode<synchronous>, transform_indices = @transform_3, window_bounds = array<i64: 1, 64>}, {pipeline_mode = #tpu.pipeline_mode<synchronous>, transform_indices = @transform_4, window_bounds = array<i64: 32, 64>}, {pipeline_mode = #tpu.pipeline_mode<synchronous>, transform_indices = @transform_5, window_bounds = array<i64: 16, 64>}, {pipeline_mode = #tpu.pipeline_mode<synchronous>, transform_indices = @transform_6, window_bounds = array<i64: 1, 64>}, {pipeline_mode = #tpu.pipeline_mode<synchronous>, transform_indices = @transform_7, window_bounds = array<i64: 128, 32>}, {pipeline_mode = #tpu.pipeline_mode<synchronous>, transform_indices = @transform_8, window_bounds = array<i64: 1, 32>}, {pipeline_mode = #tpu.pipeline_mode<synchronous>, transform_indices = @transform_9, window_bounds = array<i64: 160, 32>}, {pipeline_mode = #tpu.pipeline_mode<synchronous>, transform_indices = @transform_10, window_bounds = array<i64: 1, 32>}, {pipeline_mode = #tpu.pipeline_mode<synchronous>, transform_indices = @transform_11, window_bounds = array<i64: 64, 128>}, {pipeline_mode = #tpu.pipeline_mode<synchronous>, transform_indices = @transform_12, window_bounds = array<i64: 1, 128>}, {transform_indices = @transform_13, window_bounds = array<i64: 8, 128>}]} {
    %c0 = arith.constant 0 : index
    %c0_0 = arith.constant 0 : index
    %c0_1 = arith.constant 0 : index
    %0 = vector.load %arg1[%c0, %c0_0, %c0_1] : memref<8x8x32xf32, #tpu.memory_space<vmem>>, vector<8x8x32xf32>
    %1 = vector.shape_cast %0 : vector<8x8x32xf32> to vector<64x32xf32>
    %c0_2 = arith.constant 0 : index
    %c0_3 = arith.constant 0 : index
    %2 = vector.load %arg2[%c0_2, %c0_3] : memref<32x64xf32, #tpu.memory_space<vmem>>, vector<32x64xf32>
    %cst = arith.constant dense<0.000000e+00> : vector<64x64xf32>
    %3 = tpu.matmul %1, %2, %cst {dimension_numbers = #tpu.dot_dimension_numbers<[1], [0], [0], [1], [0, 0, 1, 1], [], []>} : vector<64x32xf32>, vector<32x64xf32>, vector<64x64xf32> -> vector<64x64xf32>
    %c0_4 = arith.constant 0 : index
    %c0_5 = arith.constant 0 : index
    %4 = vector.load %arg4[%c0_4, %c0_5] : memref<1x64xf32, #tpu.memory_space<vmem>>, vector<1x64xf32>
    %5 = vector.broadcast %4 : vector<1x64xf32> to vector<64x64xf32>
    %6 = arith.addf %3, %5 : vector<64x64xf32>
    %c0_6 = arith.constant 0 : index
    %c0_7 = arith.constant 0 : index
    %7 = vector.load %arg5[%c0_6, %c0_7] : memref<32x64xf32, #tpu.memory_space<vmem>>, vector<32x64xf32>
    %cst_8 = arith.constant dense<0.000000e+00> : vector<64x64xf32>
    %8 = tpu.matmul %1, %7, %cst_8 {dimension_numbers = #tpu.dot_dimension_numbers<[1], [0], [0], [1], [0, 0, 1, 1], [], []>} : vector<64x32xf32>, vector<32x64xf32>, vector<64x64xf32> -> vector<64x64xf32>
    %c0_9 = arith.constant 0 : index
    %c0_10 = arith.constant 0 : index
    %9 = vector.load %arg7[%c0_9, %c0_10] : memref<1x64xf32, #tpu.memory_space<vmem>>, vector<1x64xf32>
    %10 = vector.broadcast %9 : vector<1x64xf32> to vector<64x64xf32>
    %11 = arith.addf %8, %10 : vector<64x64xf32>
    %c0_11 = arith.constant 0 : index
    %c0_12 = arith.constant 0 : index
    %12 = vector.load %arg3[%c0_11, %c0_12] : memref<16x64xf32, #tpu.memory_space<vmem>>, vector<16x64xf32>
    %cst_13 = arith.constant 0.000000e+00 : f32
    %13 = vector.broadcast %cst_13 : f32 to vector<8x16xf32>
    %cst_14 = arith.constant 0.000000e+00 : f32
    %14 = vector.broadcast %cst_14 : f32 to vector<8x16xf32>
    %15 = vector.extract_strided_slice %6 {offsets = [0, 0], sizes = [8, 64], strides = [1, 1]} : vector<64x64xf32> to vector<8x64xf32>
    %cst_15 = arith.constant dense<0.000000e+00> : vector<8x64xf32>
    %16 = tpu.matmul %13, %12, %cst_15 {dimension_numbers = #tpu.dot_dimension_numbers<[1], [0], [0], [1], [0, 0, 1, 1], [], []>} : vector<8x16xf32>, vector<16x64xf32>, vector<8x64xf32> -> vector<8x64xf32>
    %17 = arith.addf %15, %16 : vector<8x64xf32>
    %18 = vector.extract_strided_slice %17 {offsets = [0, 0], sizes = [8, 16], strides = [1, 1]} : vector<8x64xf32> to vector<8x16xf32>
    %19 = arith.negf %18 : vector<8x16xf32>
    %20 = math.exp %19 : vector<8x16xf32>
    %cst_16 = arith.constant 1.000000e+00 : f32
    %21 = vector.broadcast %cst_16 : f32 to vector<8x16xf32>
    %22 = arith.addf %21, %20 : vector<8x16xf32>
    %23 = arith.divf %21, %22 : vector<8x16xf32>
    %24 = vector.extract_strided_slice %17 {offsets = [0, 16], sizes = [8, 16], strides = [1, 1]} : vector<8x64xf32> to vector<8x16xf32>
    %25 = arith.negf %24 : vector<8x16xf32>
    %26 = math.exp %25 : vector<8x16xf32>
    %cst_17 = arith.constant 1.000000e+00 : f32
    %27 = vector.broadcast %cst_17 : f32 to vector<8x16xf32>
    %28 = arith.addf %27, %26 : vector<8x16xf32>
    %29 = arith.divf %27, %28 : vector<8x16xf32>
    %30 = vector.extract_strided_slice %17 {offsets = [0, 32], sizes = [8, 16], strides = [1, 1]} : vector<8x64xf32> to vector<8x16xf32>
    %31 = math.tanh %30 : vector<8x16xf32>
    %32 = vector.extract_strided_slice %17 {offsets = [0, 48], sizes = [8, 16], strides = [1, 1]} : vector<8x64xf32> to vector<8x16xf32>
    %33 = arith.negf %32 : vector<8x16xf32>
    %34 = math.exp %33 : vector<8x16xf32>
    %cst_18 = arith.constant 1.000000e+00 : f32
    %35 = vector.broadcast %cst_18 : f32 to vector<8x16xf32>
    %36 = arith.addf %35, %34 : vector<8x16xf32>
    %37 = arith.divf %35, %36 : vector<8x16xf32>
    %38 = arith.mulf %29, %14 : vector<8x16xf32>
    %39 = arith.mulf %23, %31 : vector<8x16xf32>
    %40 = arith.addf %38, %39 : vector<8x16xf32>
    %41 = math.tanh %40 : vector<8x16xf32>
    %42 = arith.mulf %37, %41 : vector<8x16xf32>
    %43 = vector.extract_strided_slice %6 {offsets = [8, 0], sizes = [8, 64], strides = [1, 1]} : vector<64x64xf32> to vector<8x64xf32>
    %cst_19 = arith.constant dense<0.000000e+00> : vector<8x64xf32>
    %44 = tpu.matmul %42, %12, %cst_19 {dimension_numbers = #tpu.dot_dimension_numbers<[1], [0], [0], [1], [0, 0, 1, 1], [], []>} : vector<8x16xf32>, vector<16x64xf32>, vector<8x64xf32> -> vector<8x64xf32>
    %45 = arith.addf %43, %44 : vector<8x64xf32>
    %46 = vector.extract_strided_slice %45 {offsets = [0, 0], sizes = [8, 16], strides = [1, 1]} : vector<8x64xf32> to vector<8x16xf32>
    %47 = arith.negf %46 : vector<8x16xf32>
    %48 = math.exp %47 : vector<8x16xf32>
    %cst_20 = arith.constant 1.000000e+00 : f32
    %49 = vector.broadcast %cst_20 : f32 to vector<8x16xf32>
    %50 = arith.addf %49, %48 : vector<8x16xf32>
    %51 = arith.divf %49, %50 : vector<8x16xf32>
    %52 = vector.extract_strided_slice %45 {offsets = [0, 16], sizes = [8, 16], strides = [1, 1]} : vector<8x64xf32> to vector<8x16xf32>
    %53 = arith.negf %52 : vector<8x16xf32>
    %54 = math.exp %53 : vector<8x16xf32>
    %cst_21 = arith.constant 1.000000e+00 : f32
    %55 = vector.broadcast %cst_21 : f32 to vector<8x16xf32>
    %56 = arith.addf %55, %54 : vector<8x16xf32>
    %57 = arith.divf %55, %56 : vector<8x16xf32>
    %58 = vector.extract_strided_slice %45 {offsets = [0, 32], sizes = [8, 16], strides = [1, 1]} : vector<8x64xf32> to vector<8x16xf32>
    %59 = math.tanh %58 : vector<8x16xf32>
    %60 = vector.extract_strided_slice %45 {offsets = [0, 48], sizes = [8, 16], strides = [1, 1]} : vector<8x64xf32> to vector<8x16xf32>
    %61 = arith.negf %60 : vector<8x16xf32>
    %62 = math.exp %61 : vector<8x16xf32>
    %cst_22 = arith.constant 1.000000e+00 : f32
    %63 = vector.broadcast %cst_22 : f32 to vector<8x16xf32>
    %64 = arith.addf %63, %62 : vector<8x16xf32>
    %65 = arith.divf %63, %64 : vector<8x16xf32>
    %66 = arith.mulf %57, %40 : vector<8x16xf32>
    %67 = arith.mulf %51, %59 : vector<8x16xf32>
    %68 = arith.addf %66, %67 : vector<8x16xf32>
    %69 = math.tanh %68 : vector<8x16xf32>
    %70 = arith.mulf %65, %69 : vector<8x16xf32>
    %71 = vector.extract_strided_slice %6 {offsets = [16, 0], sizes = [8, 64], strides = [1, 1]} : vector<64x64xf32> to vector<8x64xf32>
    %cst_23 = arith.constant dense<0.000000e+00> : vector<8x64xf32>
    %72 = tpu.matmul %70, %12, %cst_23 {dimension_numbers = #tpu.dot_dimension_numbers<[1], [0], [0], [1], [0, 0, 1, 1], [], []>} : vector<8x16xf32>, vector<16x64xf32>, vector<8x64xf32> -> vector<8x64xf32>
    %73 = arith.addf %71, %72 : vector<8x64xf32>
    %74 = vector.extract_strided_slice %73 {offsets = [0, 0], sizes = [8, 16], strides = [1, 1]} : vector<8x64xf32> to vector<8x16xf32>
    %75 = arith.negf %74 : vector<8x16xf32>
    %76 = math.exp %75 : vector<8x16xf32>
    %cst_24 = arith.constant 1.000000e+00 : f32
    %77 = vector.broadcast %cst_24 : f32 to vector<8x16xf32>
    %78 = arith.addf %77, %76 : vector<8x16xf32>
    %79 = arith.divf %77, %78 : vector<8x16xf32>
    %80 = vector.extract_strided_slice %73 {offsets = [0, 16], sizes = [8, 16], strides = [1, 1]} : vector<8x64xf32> to vector<8x16xf32>
    %81 = arith.negf %80 : vector<8x16xf32>
    %82 = math.exp %81 : vector<8x16xf32>
    %cst_25 = arith.constant 1.000000e+00 : f32
    %83 = vector.broadcast %cst_25 : f32 to vector<8x16xf32>
    %84 = arith.addf %83, %82 : vector<8x16xf32>
    %85 = arith.divf %83, %84 : vector<8x16xf32>
    %86 = vector.extract_strided_slice %73 {offsets = [0, 32], sizes = [8, 16], strides = [1, 1]} : vector<8x64xf32> to vector<8x16xf32>
    %87 = math.tanh %86 : vector<8x16xf32>
    %88 = vector.extract_strided_slice %73 {offsets = [0, 48], sizes = [8, 16], strides = [1, 1]} : vector<8x64xf32> to vector<8x16xf32>
    %89 = arith.negf %88 : vector<8x16xf32>
    %90 = math.exp %89 : vector<8x16xf32>
    %cst_26 = arith.constant 1.000000e+00 : f32
    %91 = vector.broadcast %cst_26 : f32 to vector<8x16xf32>
    %92 = arith.addf %91, %90 : vector<8x16xf32>
    %93 = arith.divf %91, %92 : vector<8x16xf32>
    %94 = arith.mulf %85, %68 : vector<8x16xf32>
    %95 = arith.mulf %79, %87 : vector<8x16xf32>
    %96 = arith.addf %94, %95 : vector<8x16xf32>
    %97 = math.tanh %96 : vector<8x16xf32>
    %98 = arith.mulf %93, %97 : vector<8x16xf32>
    %99 = vector.extract_strided_slice %6 {offsets = [24, 0], sizes = [8, 64], strides = [1, 1]} : vector<64x64xf32> to vector<8x64xf32>
    %cst_27 = arith.constant dense<0.000000e+00> : vector<8x64xf32>
    %100 = tpu.matmul %98, %12, %cst_27 {dimension_numbers = #tpu.dot_dimension_numbers<[1], [0], [0], [1], [0, 0, 1, 1], [], []>} : vector<8x16xf32>, vector<16x64xf32>, vector<8x64xf32> -> vector<8x64xf32>
    %101 = arith.addf %99, %100 : vector<8x64xf32>
    %102 = vector.extract_strided_slice %101 {offsets = [0, 0], sizes = [8, 16], strides = [1, 1]} : vector<8x64xf32> to vector<8x16xf32>
    %103 = arith.negf %102 : vector<8x16xf32>
    %104 = math.exp %103 : vector<8x16xf32>
    %cst_28 = arith.constant 1.000000e+00 : f32
    %105 = vector.broadcast %cst_28 : f32 to vector<8x16xf32>
    %106 = arith.addf %105, %104 : vector<8x16xf32>
    %107 = arith.divf %105, %106 : vector<8x16xf32>
    %108 = vector.extract_strided_slice %101 {offsets = [0, 16], sizes = [8, 16], strides = [1, 1]} : vector<8x64xf32> to vector<8x16xf32>
    %109 = arith.negf %108 : vector<8x16xf32>
    %110 = math.exp %109 : vector<8x16xf32>
    %cst_29 = arith.constant 1.000000e+00 : f32
    %111 = vector.broadcast %cst_29 : f32 to vector<8x16xf32>
    %112 = arith.addf %111, %110 : vector<8x16xf32>
    %113 = arith.divf %111, %112 : vector<8x16xf32>
    %114 = vector.extract_strided_slice %101 {offsets = [0, 32], sizes = [8, 16], strides = [1, 1]} : vector<8x64xf32> to vector<8x16xf32>
    %115 = math.tanh %114 : vector<8x16xf32>
    %116 = vector.extract_strided_slice %101 {offsets = [0, 48], sizes = [8, 16], strides = [1, 1]} : vector<8x64xf32> to vector<8x16xf32>
    %117 = arith.negf %116 : vector<8x16xf32>
    %118 = math.exp %117 : vector<8x16xf32>
    %cst_30 = arith.constant 1.000000e+00 : f32
    %119 = vector.broadcast %cst_30 : f32 to vector<8x16xf32>
    %120 = arith.addf %119, %118 : vector<8x16xf32>
    %121 = arith.divf %119, %120 : vector<8x16xf32>
    %122 = arith.mulf %113, %96 : vector<8x16xf32>
    %123 = arith.mulf %107, %115 : vector<8x16xf32>
    %124 = arith.addf %122, %123 : vector<8x16xf32>
    %125 = math.tanh %124 : vector<8x16xf32>
    %126 = arith.mulf %121, %125 : vector<8x16xf32>
    %127 = vector.extract_strided_slice %6 {offsets = [32, 0], sizes = [8, 64], strides = [1, 1]} : vector<64x64xf32> to vector<8x64xf32>
    %cst_31 = arith.constant dense<0.000000e+00> : vector<8x64xf32>
    %128 = tpu.matmul %126, %12, %cst_31 {dimension_numbers = #tpu.dot_dimension_numbers<[1], [0], [0], [1], [0, 0, 1, 1], [], []>} : vector<8x16xf32>, vector<16x64xf32>, vector<8x64xf32> -> vector<8x64xf32>
    %129 = arith.addf %127, %128 : vector<8x64xf32>
    %130 = vector.extract_strided_slice %129 {offsets = [0, 0], sizes = [8, 16], strides = [1, 1]} : vector<8x64xf32> to vector<8x16xf32>
    %131 = arith.negf %130 : vector<8x16xf32>
    %132 = math.exp %131 : vector<8x16xf32>
    %cst_32 = arith.constant 1.000000e+00 : f32
    %133 = vector.broadcast %cst_32 : f32 to vector<8x16xf32>
    %134 = arith.addf %133, %132 : vector<8x16xf32>
    %135 = arith.divf %133, %134 : vector<8x16xf32>
    %136 = vector.extract_strided_slice %129 {offsets = [0, 16], sizes = [8, 16], strides = [1, 1]} : vector<8x64xf32> to vector<8x16xf32>
    %137 = arith.negf %136 : vector<8x16xf32>
    %138 = math.exp %137 : vector<8x16xf32>
    %cst_33 = arith.constant 1.000000e+00 : f32
    %139 = vector.broadcast %cst_33 : f32 to vector<8x16xf32>
    %140 = arith.addf %139, %138 : vector<8x16xf32>
    %141 = arith.divf %139, %140 : vector<8x16xf32>
    %142 = vector.extract_strided_slice %129 {offsets = [0, 32], sizes = [8, 16], strides = [1, 1]} : vector<8x64xf32> to vector<8x16xf32>
    %143 = math.tanh %142 : vector<8x16xf32>
    %144 = vector.extract_strided_slice %129 {offsets = [0, 48], sizes = [8, 16], strides = [1, 1]} : vector<8x64xf32> to vector<8x16xf32>
    %145 = arith.negf %144 : vector<8x16xf32>
    %146 = math.exp %145 : vector<8x16xf32>
    %cst_34 = arith.constant 1.000000e+00 : f32
    %147 = vector.broadcast %cst_34 : f32 to vector<8x16xf32>
    %148 = arith.addf %147, %146 : vector<8x16xf32>
    %149 = arith.divf %147, %148 : vector<8x16xf32>
    %150 = arith.mulf %141, %124 : vector<8x16xf32>
    %151 = arith.mulf %135, %143 : vector<8x16xf32>
    %152 = arith.addf %150, %151 : vector<8x16xf32>
    %153 = math.tanh %152 : vector<8x16xf32>
    %154 = arith.mulf %149, %153 : vector<8x16xf32>
    %155 = vector.extract_strided_slice %6 {offsets = [40, 0], sizes = [8, 64], strides = [1, 1]} : vector<64x64xf32> to vector<8x64xf32>
    %cst_35 = arith.constant dense<0.000000e+00> : vector<8x64xf32>
    %156 = tpu.matmul %154, %12, %cst_35 {dimension_numbers = #tpu.dot_dimension_numbers<[1], [0], [0], [1], [0, 0, 1, 1], [], []>} : vector<8x16xf32>, vector<16x64xf32>, vector<8x64xf32> -> vector<8x64xf32>
    %157 = arith.addf %155, %156 : vector<8x64xf32>
    %158 = vector.extract_strided_slice %157 {offsets = [0, 0], sizes = [8, 16], strides = [1, 1]} : vector<8x64xf32> to vector<8x16xf32>
    %159 = arith.negf %158 : vector<8x16xf32>
    %160 = math.exp %159 : vector<8x16xf32>
    %cst_36 = arith.constant 1.000000e+00 : f32
    %161 = vector.broadcast %cst_36 : f32 to vector<8x16xf32>
    %162 = arith.addf %161, %160 : vector<8x16xf32>
    %163 = arith.divf %161, %162 : vector<8x16xf32>
    %164 = vector.extract_strided_slice %157 {offsets = [0, 16], sizes = [8, 16], strides = [1, 1]} : vector<8x64xf32> to vector<8x16xf32>
    %165 = arith.negf %164 : vector<8x16xf32>
    %166 = math.exp %165 : vector<8x16xf32>
    %cst_37 = arith.constant 1.000000e+00 : f32
    %167 = vector.broadcast %cst_37 : f32 to vector<8x16xf32>
    %168 = arith.addf %167, %166 : vector<8x16xf32>
    %169 = arith.divf %167, %168 : vector<8x16xf32>
    %170 = vector.extract_strided_slice %157 {offsets = [0, 32], sizes = [8, 16], strides = [1, 1]} : vector<8x64xf32> to vector<8x16xf32>
    %171 = math.tanh %170 : vector<8x16xf32>
    %172 = vector.extract_strided_slice %157 {offsets = [0, 48], sizes = [8, 16], strides = [1, 1]} : vector<8x64xf32> to vector<8x16xf32>
    %173 = arith.negf %172 : vector<8x16xf32>
    %174 = math.exp %173 : vector<8x16xf32>
    %cst_38 = arith.constant 1.000000e+00 : f32
    %175 = vector.broadcast %cst_38 : f32 to vector<8x16xf32>
    %176 = arith.addf %175, %174 : vector<8x16xf32>
    %177 = arith.divf %175, %176 : vector<8x16xf32>
    %178 = arith.mulf %169, %152 : vector<8x16xf32>
    %179 = arith.mulf %163, %171 : vector<8x16xf32>
    %180 = arith.addf %178, %179 : vector<8x16xf32>
    %181 = math.tanh %180 : vector<8x16xf32>
    %182 = arith.mulf %177, %181 : vector<8x16xf32>
    %183 = vector.extract_strided_slice %6 {offsets = [48, 0], sizes = [8, 64], strides = [1, 1]} : vector<64x64xf32> to vector<8x64xf32>
    %cst_39 = arith.constant dense<0.000000e+00> : vector<8x64xf32>
    %184 = tpu.matmul %182, %12, %cst_39 {dimension_numbers = #tpu.dot_dimension_numbers<[1], [0], [0], [1], [0, 0, 1, 1], [], []>} : vector<8x16xf32>, vector<16x64xf32>, vector<8x64xf32> -> vector<8x64xf32>
    %185 = arith.addf %183, %184 : vector<8x64xf32>
    %186 = vector.extract_strided_slice %185 {offsets = [0, 0], sizes = [8, 16], strides = [1, 1]} : vector<8x64xf32> to vector<8x16xf32>
    %187 = arith.negf %186 : vector<8x16xf32>
    %188 = math.exp %187 : vector<8x16xf32>
    %cst_40 = arith.constant 1.000000e+00 : f32
    %189 = vector.broadcast %cst_40 : f32 to vector<8x16xf32>
    %190 = arith.addf %189, %188 : vector<8x16xf32>
    %191 = arith.divf %189, %190 : vector<8x16xf32>
    %192 = vector.extract_strided_slice %185 {offsets = [0, 16], sizes = [8, 16], strides = [1, 1]} : vector<8x64xf32> to vector<8x16xf32>
    %193 = arith.negf %192 : vector<8x16xf32>
    %194 = math.exp %193 : vector<8x16xf32>
    %cst_41 = arith.constant 1.000000e+00 : f32
    %195 = vector.broadcast %cst_41 : f32 to vector<8x16xf32>
    %196 = arith.addf %195, %194 : vector<8x16xf32>
    %197 = arith.divf %195, %196 : vector<8x16xf32>
    %198 = vector.extract_strided_slice %185 {offsets = [0, 32], sizes = [8, 16], strides = [1, 1]} : vector<8x64xf32> to vector<8x16xf32>
    %199 = math.tanh %198 : vector<8x16xf32>
    %200 = vector.extract_strided_slice %185 {offsets = [0, 48], sizes = [8, 16], strides = [1, 1]} : vector<8x64xf32> to vector<8x16xf32>
    %201 = arith.negf %200 : vector<8x16xf32>
    %202 = math.exp %201 : vector<8x16xf32>
    %cst_42 = arith.constant 1.000000e+00 : f32
    %203 = vector.broadcast %cst_42 : f32 to vector<8x16xf32>
    %204 = arith.addf %203, %202 : vector<8x16xf32>
    %205 = arith.divf %203, %204 : vector<8x16xf32>
    %206 = arith.mulf %197, %180 : vector<8x16xf32>
    %207 = arith.mulf %191, %199 : vector<8x16xf32>
    %208 = arith.addf %206, %207 : vector<8x16xf32>
    %209 = math.tanh %208 : vector<8x16xf32>
    %210 = arith.mulf %205, %209 : vector<8x16xf32>
    %211 = vector.extract_strided_slice %6 {offsets = [56, 0], sizes = [8, 64], strides = [1, 1]} : vector<64x64xf32> to vector<8x64xf32>
    %cst_43 = arith.constant dense<0.000000e+00> : vector<8x64xf32>
    %212 = tpu.matmul %210, %12, %cst_43 {dimension_numbers = #tpu.dot_dimension_numbers<[1], [0], [0], [1], [0, 0, 1, 1], [], []>} : vector<8x16xf32>, vector<16x64xf32>, vector<8x64xf32> -> vector<8x64xf32>
    %213 = arith.addf %211, %212 : vector<8x64xf32>
    %214 = vector.extract_strided_slice %213 {offsets = [0, 0], sizes = [8, 16], strides = [1, 1]} : vector<8x64xf32> to vector<8x16xf32>
    %215 = arith.negf %214 : vector<8x16xf32>
    %216 = math.exp %215 : vector<8x16xf32>
    %cst_44 = arith.constant 1.000000e+00 : f32
    %217 = vector.broadcast %cst_44 : f32 to vector<8x16xf32>
    %218 = arith.addf %217, %216 : vector<8x16xf32>
    %219 = arith.divf %217, %218 : vector<8x16xf32>
    %220 = vector.extract_strided_slice %213 {offsets = [0, 16], sizes = [8, 16], strides = [1, 1]} : vector<8x64xf32> to vector<8x16xf32>
    %221 = arith.negf %220 : vector<8x16xf32>
    %222 = math.exp %221 : vector<8x16xf32>
    %cst_45 = arith.constant 1.000000e+00 : f32
    %223 = vector.broadcast %cst_45 : f32 to vector<8x16xf32>
    %224 = arith.addf %223, %222 : vector<8x16xf32>
    %225 = arith.divf %223, %224 : vector<8x16xf32>
    %226 = vector.extract_strided_slice %213 {offsets = [0, 32], sizes = [8, 16], strides = [1, 1]} : vector<8x64xf32> to vector<8x16xf32>
    %227 = math.tanh %226 : vector<8x16xf32>
    %228 = vector.extract_strided_slice %213 {offsets = [0, 48], sizes = [8, 16], strides = [1, 1]} : vector<8x64xf32> to vector<8x16xf32>
    %229 = arith.negf %228 : vector<8x16xf32>
    %230 = math.exp %229 : vector<8x16xf32>
    %cst_46 = arith.constant 1.000000e+00 : f32
    %231 = vector.broadcast %cst_46 : f32 to vector<8x16xf32>
    %232 = arith.addf %231, %230 : vector<8x16xf32>
    %233 = arith.divf %231, %232 : vector<8x16xf32>
    %234 = arith.mulf %225, %208 : vector<8x16xf32>
    %235 = arith.mulf %219, %227 : vector<8x16xf32>
    %236 = arith.addf %234, %235 : vector<8x16xf32>
    %237 = math.tanh %236 : vector<8x16xf32>
    %238 = arith.mulf %233, %237 : vector<8x16xf32>
    %c0_47 = arith.constant 0 : index
    %c0_48 = arith.constant 0 : index
    %239 = vector.load %arg6[%c0_47, %c0_48] : memref<16x64xf32, #tpu.memory_space<vmem>>, vector<16x64xf32>
    %cst_49 = arith.constant 0.000000e+00 : f32
    %240 = vector.broadcast %cst_49 : f32 to vector<8x16xf32>
    %cst_50 = arith.constant 0.000000e+00 : f32
    %241 = vector.broadcast %cst_50 : f32 to vector<8x16xf32>
    %242 = vector.extract_strided_slice %11 {offsets = [56, 0], sizes = [8, 64], strides = [1, 1]} : vector<64x64xf32> to vector<8x64xf32>
    %cst_51 = arith.constant dense<0.000000e+00> : vector<8x64xf32>
    %243 = tpu.matmul %240, %239, %cst_51 {dimension_numbers = #tpu.dot_dimension_numbers<[1], [0], [0], [1], [0, 0, 1, 1], [], []>} : vector<8x16xf32>, vector<16x64xf32>, vector<8x64xf32> -> vector<8x64xf32>
    %244 = arith.addf %242, %243 : vector<8x64xf32>
    %245 = vector.extract_strided_slice %244 {offsets = [0, 0], sizes = [8, 16], strides = [1, 1]} : vector<8x64xf32> to vector<8x16xf32>
    %246 = arith.negf %245 : vector<8x16xf32>
    %247 = math.exp %246 : vector<8x16xf32>
    %cst_52 = arith.constant 1.000000e+00 : f32
    %248 = vector.broadcast %cst_52 : f32 to vector<8x16xf32>
    %249 = arith.addf %248, %247 : vector<8x16xf32>
    %250 = arith.divf %248, %249 : vector<8x16xf32>
    %251 = vector.extract_strided_slice %244 {offsets = [0, 16], sizes = [8, 16], strides = [1, 1]} : vector<8x64xf32> to vector<8x16xf32>
    %252 = arith.negf %251 : vector<8x16xf32>
    %253 = math.exp %252 : vector<8x16xf32>
    %cst_53 = arith.constant 1.000000e+00 : f32
    %254 = vector.broadcast %cst_53 : f32 to vector<8x16xf32>
    %255 = arith.addf %254, %253 : vector<8x16xf32>
    %256 = arith.divf %254, %255 : vector<8x16xf32>
    %257 = vector.extract_strided_slice %244 {offsets = [0, 32], sizes = [8, 16], strides = [1, 1]} : vector<8x64xf32> to vector<8x16xf32>
    %258 = math.tanh %257 : vector<8x16xf32>
    %259 = vector.extract_strided_slice %244 {offsets = [0, 48], sizes = [8, 16], strides = [1, 1]} : vector<8x64xf32> to vector<8x16xf32>
    %260 = arith.negf %259 : vector<8x16xf32>
    %261 = math.exp %260 : vector<8x16xf32>
    %cst_54 = arith.constant 1.000000e+00 : f32
    %262 = vector.broadcast %cst_54 : f32 to vector<8x16xf32>
    %263 = arith.addf %262, %261 : vector<8x16xf32>
    %264 = arith.divf %262, %263 : vector<8x16xf32>
    %265 = arith.mulf %256, %241 : vector<8x16xf32>
    %266 = arith.mulf %250, %258 : vector<8x16xf32>
    %267 = arith.addf %265, %266 : vector<8x16xf32>
    %268 = math.tanh %267 : vector<8x16xf32>
    %269 = arith.mulf %264, %268 : vector<8x16xf32>
    %270 = vector.extract_strided_slice %11 {offsets = [48, 0], sizes = [8, 64], strides = [1, 1]} : vector<64x64xf32> to vector<8x64xf32>
    %cst_55 = arith.constant dense<0.000000e+00> : vector<8x64xf32>
    %271 = tpu.matmul %269, %239, %cst_55 {dimension_numbers = #tpu.dot_dimension_numbers<[1], [0], [0], [1], [0, 0, 1, 1], [], []>} : vector<8x16xf32>, vector<16x64xf32>, vector<8x64xf32> -> vector<8x64xf32>
    %272 = arith.addf %270, %271 : vector<8x64xf32>
    %273 = vector.extract_strided_slice %272 {offsets = [0, 0], sizes = [8, 16], strides = [1, 1]} : vector<8x64xf32> to vector<8x16xf32>
    %274 = arith.negf %273 : vector<8x16xf32>
    %275 = math.exp %274 : vector<8x16xf32>
    %cst_56 = arith.constant 1.000000e+00 : f32
    %276 = vector.broadcast %cst_56 : f32 to vector<8x16xf32>
    %277 = arith.addf %276, %275 : vector<8x16xf32>
    %278 = arith.divf %276, %277 : vector<8x16xf32>
    %279 = vector.extract_strided_slice %272 {offsets = [0, 16], sizes = [8, 16], strides = [1, 1]} : vector<8x64xf32> to vector<8x16xf32>
    %280 = arith.negf %279 : vector<8x16xf32>
    %281 = math.exp %280 : vector<8x16xf32>
    %cst_57 = arith.constant 1.000000e+00 : f32
    %282 = vector.broadcast %cst_57 : f32 to vector<8x16xf32>
    %283 = arith.addf %282, %281 : vector<8x16xf32>
    %284 = arith.divf %282, %283 : vector<8x16xf32>
    %285 = vector.extract_strided_slice %272 {offsets = [0, 32], sizes = [8, 16], strides = [1, 1]} : vector<8x64xf32> to vector<8x16xf32>
    %286 = math.tanh %285 : vector<8x16xf32>
    %287 = vector.extract_strided_slice %272 {offsets = [0, 48], sizes = [8, 16], strides = [1, 1]} : vector<8x64xf32> to vector<8x16xf32>
    %288 = arith.negf %287 : vector<8x16xf32>
    %289 = math.exp %288 : vector<8x16xf32>
    %cst_58 = arith.constant 1.000000e+00 : f32
    %290 = vector.broadcast %cst_58 : f32 to vector<8x16xf32>
    %291 = arith.addf %290, %289 : vector<8x16xf32>
    %292 = arith.divf %290, %291 : vector<8x16xf32>
    %293 = arith.mulf %284, %267 : vector<8x16xf32>
    %294 = arith.mulf %278, %286 : vector<8x16xf32>
    %295 = arith.addf %293, %294 : vector<8x16xf32>
    %296 = math.tanh %295 : vector<8x16xf32>
    %297 = arith.mulf %292, %296 : vector<8x16xf32>
    %298 = vector.extract_strided_slice %11 {offsets = [40, 0], sizes = [8, 64], strides = [1, 1]} : vector<64x64xf32> to vector<8x64xf32>
    %cst_59 = arith.constant dense<0.000000e+00> : vector<8x64xf32>
    %299 = tpu.matmul %297, %239, %cst_59 {dimension_numbers = #tpu.dot_dimension_numbers<[1], [0], [0], [1], [0, 0, 1, 1], [], []>} : vector<8x16xf32>, vector<16x64xf32>, vector<8x64xf32> -> vector<8x64xf32>
    %300 = arith.addf %298, %299 : vector<8x64xf32>
    %301 = vector.extract_strided_slice %300 {offsets = [0, 0], sizes = [8, 16], strides = [1, 1]} : vector<8x64xf32> to vector<8x16xf32>
    %302 = arith.negf %301 : vector<8x16xf32>
    %303 = math.exp %302 : vector<8x16xf32>
    %cst_60 = arith.constant 1.000000e+00 : f32
    %304 = vector.broadcast %cst_60 : f32 to vector<8x16xf32>
    %305 = arith.addf %304, %303 : vector<8x16xf32>
    %306 = arith.divf %304, %305 : vector<8x16xf32>
    %307 = vector.extract_strided_slice %300 {offsets = [0, 16], sizes = [8, 16], strides = [1, 1]} : vector<8x64xf32> to vector<8x16xf32>
    %308 = arith.negf %307 : vector<8x16xf32>
    %309 = math.exp %308 : vector<8x16xf32>
    %cst_61 = arith.constant 1.000000e+00 : f32
    %310 = vector.broadcast %cst_61 : f32 to vector<8x16xf32>
    %311 = arith.addf %310, %309 : vector<8x16xf32>
    %312 = arith.divf %310, %311 : vector<8x16xf32>
    %313 = vector.extract_strided_slice %300 {offsets = [0, 32], sizes = [8, 16], strides = [1, 1]} : vector<8x64xf32> to vector<8x16xf32>
    %314 = math.tanh %313 : vector<8x16xf32>
    %315 = vector.extract_strided_slice %300 {offsets = [0, 48], sizes = [8, 16], strides = [1, 1]} : vector<8x64xf32> to vector<8x16xf32>
    %316 = arith.negf %315 : vector<8x16xf32>
    %317 = math.exp %316 : vector<8x16xf32>
    %cst_62 = arith.constant 1.000000e+00 : f32
    %318 = vector.broadcast %cst_62 : f32 to vector<8x16xf32>
    %319 = arith.addf %318, %317 : vector<8x16xf32>
    %320 = arith.divf %318, %319 : vector<8x16xf32>
    %321 = arith.mulf %312, %295 : vector<8x16xf32>
    %322 = arith.mulf %306, %314 : vector<8x16xf32>
    %323 = arith.addf %321, %322 : vector<8x16xf32>
    %324 = math.tanh %323 : vector<8x16xf32>
    %325 = arith.mulf %320, %324 : vector<8x16xf32>
    %326 = vector.extract_strided_slice %11 {offsets = [32, 0], sizes = [8, 64], strides = [1, 1]} : vector<64x64xf32> to vector<8x64xf32>
    %cst_63 = arith.constant dense<0.000000e+00> : vector<8x64xf32>
    %327 = tpu.matmul %325, %239, %cst_63 {dimension_numbers = #tpu.dot_dimension_numbers<[1], [0], [0], [1], [0, 0, 1, 1], [], []>} : vector<8x16xf32>, vector<16x64xf32>, vector<8x64xf32> -> vector<8x64xf32>
    %328 = arith.addf %326, %327 : vector<8x64xf32>
    %329 = vector.extract_strided_slice %328 {offsets = [0, 0], sizes = [8, 16], strides = [1, 1]} : vector<8x64xf32> to vector<8x16xf32>
    %330 = arith.negf %329 : vector<8x16xf32>
    %331 = math.exp %330 : vector<8x16xf32>
    %cst_64 = arith.constant 1.000000e+00 : f32
    %332 = vector.broadcast %cst_64 : f32 to vector<8x16xf32>
    %333 = arith.addf %332, %331 : vector<8x16xf32>
    %334 = arith.divf %332, %333 : vector<8x16xf32>
    %335 = vector.extract_strided_slice %328 {offsets = [0, 16], sizes = [8, 16], strides = [1, 1]} : vector<8x64xf32> to vector<8x16xf32>
    %336 = arith.negf %335 : vector<8x16xf32>
    %337 = math.exp %336 : vector<8x16xf32>
    %cst_65 = arith.constant 1.000000e+00 : f32
    %338 = vector.broadcast %cst_65 : f32 to vector<8x16xf32>
    %339 = arith.addf %338, %337 : vector<8x16xf32>
    %340 = arith.divf %338, %339 : vector<8x16xf32>
    %341 = vector.extract_strided_slice %328 {offsets = [0, 32], sizes = [8, 16], strides = [1, 1]} : vector<8x64xf32> to vector<8x16xf32>
    %342 = math.tanh %341 : vector<8x16xf32>
    %343 = vector.extract_strided_slice %328 {offsets = [0, 48], sizes = [8, 16], strides = [1, 1]} : vector<8x64xf32> to vector<8x16xf32>
    %344 = arith.negf %343 : vector<8x16xf32>
    %345 = math.exp %344 : vector<8x16xf32>
    %cst_66 = arith.constant 1.000000e+00 : f32
    %346 = vector.broadcast %cst_66 : f32 to vector<8x16xf32>
    %347 = arith.addf %346, %345 : vector<8x16xf32>
    %348 = arith.divf %346, %347 : vector<8x16xf32>
    %349 = arith.mulf %340, %323 : vector<8x16xf32>
    %350 = arith.mulf %334, %342 : vector<8x16xf32>
    %351 = arith.addf %349, %350 : vector<8x16xf32>
    %352 = math.tanh %351 : vector<8x16xf32>
    %353 = arith.mulf %348, %352 : vector<8x16xf32>
    %354 = vector.extract_strided_slice %11 {offsets = [24, 0], sizes = [8, 64], strides = [1, 1]} : vector<64x64xf32> to vector<8x64xf32>
    %cst_67 = arith.constant dense<0.000000e+00> : vector<8x64xf32>
    %355 = tpu.matmul %353, %239, %cst_67 {dimension_numbers = #tpu.dot_dimension_numbers<[1], [0], [0], [1], [0, 0, 1, 1], [], []>} : vector<8x16xf32>, vector<16x64xf32>, vector<8x64xf32> -> vector<8x64xf32>
    %356 = arith.addf %354, %355 : vector<8x64xf32>
    %357 = vector.extract_strided_slice %356 {offsets = [0, 0], sizes = [8, 16], strides = [1, 1]} : vector<8x64xf32> to vector<8x16xf32>
    %358 = arith.negf %357 : vector<8x16xf32>
    %359 = math.exp %358 : vector<8x16xf32>
    %cst_68 = arith.constant 1.000000e+00 : f32
    %360 = vector.broadcast %cst_68 : f32 to vector<8x16xf32>
    %361 = arith.addf %360, %359 : vector<8x16xf32>
    %362 = arith.divf %360, %361 : vector<8x16xf32>
    %363 = vector.extract_strided_slice %356 {offsets = [0, 16], sizes = [8, 16], strides = [1, 1]} : vector<8x64xf32> to vector<8x16xf32>
    %364 = arith.negf %363 : vector<8x16xf32>
    %365 = math.exp %364 : vector<8x16xf32>
    %cst_69 = arith.constant 1.000000e+00 : f32
    %366 = vector.broadcast %cst_69 : f32 to vector<8x16xf32>
    %367 = arith.addf %366, %365 : vector<8x16xf32>
    %368 = arith.divf %366, %367 : vector<8x16xf32>
    %369 = vector.extract_strided_slice %356 {offsets = [0, 32], sizes = [8, 16], strides = [1, 1]} : vector<8x64xf32> to vector<8x16xf32>
    %370 = math.tanh %369 : vector<8x16xf32>
    %371 = vector.extract_strided_slice %356 {offsets = [0, 48], sizes = [8, 16], strides = [1, 1]} : vector<8x64xf32> to vector<8x16xf32>
    %372 = arith.negf %371 : vector<8x16xf32>
    %373 = math.exp %372 : vector<8x16xf32>
    %cst_70 = arith.constant 1.000000e+00 : f32
    %374 = vector.broadcast %cst_70 : f32 to vector<8x16xf32>
    %375 = arith.addf %374, %373 : vector<8x16xf32>
    %376 = arith.divf %374, %375 : vector<8x16xf32>
    %377 = arith.mulf %368, %351 : vector<8x16xf32>
    %378 = arith.mulf %362, %370 : vector<8x16xf32>
    %379 = arith.addf %377, %378 : vector<8x16xf32>
    %380 = math.tanh %379 : vector<8x16xf32>
    %381 = arith.mulf %376, %380 : vector<8x16xf32>
    %382 = vector.extract_strided_slice %11 {offsets = [16, 0], sizes = [8, 64], strides = [1, 1]} : vector<64x64xf32> to vector<8x64xf32>
    %cst_71 = arith.constant dense<0.000000e+00> : vector<8x64xf32>
    %383 = tpu.matmul %381, %239, %cst_71 {dimension_numbers = #tpu.dot_dimension_numbers<[1], [0], [0], [1], [0, 0, 1, 1], [], []>} : vector<8x16xf32>, vector<16x64xf32>, vector<8x64xf32> -> vector<8x64xf32>
    %384 = arith.addf %382, %383 : vector<8x64xf32>
    %385 = vector.extract_strided_slice %384 {offsets = [0, 0], sizes = [8, 16], strides = [1, 1]} : vector<8x64xf32> to vector<8x16xf32>
    %386 = arith.negf %385 : vector<8x16xf32>
    %387 = math.exp %386 : vector<8x16xf32>
    %cst_72 = arith.constant 1.000000e+00 : f32
    %388 = vector.broadcast %cst_72 : f32 to vector<8x16xf32>
    %389 = arith.addf %388, %387 : vector<8x16xf32>
    %390 = arith.divf %388, %389 : vector<8x16xf32>
    %391 = vector.extract_strided_slice %384 {offsets = [0, 16], sizes = [8, 16], strides = [1, 1]} : vector<8x64xf32> to vector<8x16xf32>
    %392 = arith.negf %391 : vector<8x16xf32>
    %393 = math.exp %392 : vector<8x16xf32>
    %cst_73 = arith.constant 1.000000e+00 : f32
    %394 = vector.broadcast %cst_73 : f32 to vector<8x16xf32>
    %395 = arith.addf %394, %393 : vector<8x16xf32>
    %396 = arith.divf %394, %395 : vector<8x16xf32>
    %397 = vector.extract_strided_slice %384 {offsets = [0, 32], sizes = [8, 16], strides = [1, 1]} : vector<8x64xf32> to vector<8x16xf32>
    %398 = math.tanh %397 : vector<8x16xf32>
    %399 = vector.extract_strided_slice %384 {offsets = [0, 48], sizes = [8, 16], strides = [1, 1]} : vector<8x64xf32> to vector<8x16xf32>
    %400 = arith.negf %399 : vector<8x16xf32>
    %401 = math.exp %400 : vector<8x16xf32>
    %cst_74 = arith.constant 1.000000e+00 : f32
    %402 = vector.broadcast %cst_74 : f32 to vector<8x16xf32>
    %403 = arith.addf %402, %401 : vector<8x16xf32>
    %404 = arith.divf %402, %403 : vector<8x16xf32>
    %405 = arith.mulf %396, %379 : vector<8x16xf32>
    %406 = arith.mulf %390, %398 : vector<8x16xf32>
    %407 = arith.addf %405, %406 : vector<8x16xf32>
    %408 = math.tanh %407 : vector<8x16xf32>
    %409 = arith.mulf %404, %408 : vector<8x16xf32>
    %410 = vector.extract_strided_slice %11 {offsets = [8, 0], sizes = [8, 64], strides = [1, 1]} : vector<64x64xf32> to vector<8x64xf32>
    %cst_75 = arith.constant dense<0.000000e+00> : vector<8x64xf32>
    %411 = tpu.matmul %409, %239, %cst_75 {dimension_numbers = #tpu.dot_dimension_numbers<[1], [0], [0], [1], [0, 0, 1, 1], [], []>} : vector<8x16xf32>, vector<16x64xf32>, vector<8x64xf32> -> vector<8x64xf32>
    %412 = arith.addf %410, %411 : vector<8x64xf32>
    %413 = vector.extract_strided_slice %412 {offsets = [0, 0], sizes = [8, 16], strides = [1, 1]} : vector<8x64xf32> to vector<8x16xf32>
    %414 = arith.negf %413 : vector<8x16xf32>
    %415 = math.exp %414 : vector<8x16xf32>
    %cst_76 = arith.constant 1.000000e+00 : f32
    %416 = vector.broadcast %cst_76 : f32 to vector<8x16xf32>
    %417 = arith.addf %416, %415 : vector<8x16xf32>
    %418 = arith.divf %416, %417 : vector<8x16xf32>
    %419 = vector.extract_strided_slice %412 {offsets = [0, 16], sizes = [8, 16], strides = [1, 1]} : vector<8x64xf32> to vector<8x16xf32>
    %420 = arith.negf %419 : vector<8x16xf32>
    %421 = math.exp %420 : vector<8x16xf32>
    %cst_77 = arith.constant 1.000000e+00 : f32
    %422 = vector.broadcast %cst_77 : f32 to vector<8x16xf32>
    %423 = arith.addf %422, %421 : vector<8x16xf32>
    %424 = arith.divf %422, %423 : vector<8x16xf32>
    %425 = vector.extract_strided_slice %412 {offsets = [0, 32], sizes = [8, 16], strides = [1, 1]} : vector<8x64xf32> to vector<8x16xf32>
    %426 = math.tanh %425 : vector<8x16xf32>
    %427 = vector.extract_strided_slice %412 {offsets = [0, 48], sizes = [8, 16], strides = [1, 1]} : vector<8x64xf32> to vector<8x16xf32>
    %428 = arith.negf %427 : vector<8x16xf32>
    %429 = math.exp %428 : vector<8x16xf32>
    %cst_78 = arith.constant 1.000000e+00 : f32
    %430 = vector.broadcast %cst_78 : f32 to vector<8x16xf32>
    %431 = arith.addf %430, %429 : vector<8x16xf32>
    %432 = arith.divf %430, %431 : vector<8x16xf32>
    %433 = arith.mulf %424, %407 : vector<8x16xf32>
    %434 = arith.mulf %418, %426 : vector<8x16xf32>
    %435 = arith.addf %433, %434 : vector<8x16xf32>
    %436 = math.tanh %435 : vector<8x16xf32>
    %437 = arith.mulf %432, %436 : vector<8x16xf32>
    %438 = vector.extract_strided_slice %11 {offsets = [0, 0], sizes = [8, 64], strides = [1, 1]} : vector<64x64xf32> to vector<8x64xf32>
    %cst_79 = arith.constant dense<0.000000e+00> : vector<8x64xf32>
    %439 = tpu.matmul %437, %239, %cst_79 {dimension_numbers = #tpu.dot_dimension_numbers<[1], [0], [0], [1], [0, 0, 1, 1], [], []>} : vector<8x16xf32>, vector<16x64xf32>, vector<8x64xf32> -> vector<8x64xf32>
    %440 = arith.addf %438, %439 : vector<8x64xf32>
    %441 = vector.extract_strided_slice %440 {offsets = [0, 0], sizes = [8, 16], strides = [1, 1]} : vector<8x64xf32> to vector<8x16xf32>
    %442 = arith.negf %441 : vector<8x16xf32>
    %443 = math.exp %442 : vector<8x16xf32>
    %cst_80 = arith.constant 1.000000e+00 : f32
    %444 = vector.broadcast %cst_80 : f32 to vector<8x16xf32>
    %445 = arith.addf %444, %443 : vector<8x16xf32>
    %446 = arith.divf %444, %445 : vector<8x16xf32>
    %447 = vector.extract_strided_slice %440 {offsets = [0, 16], sizes = [8, 16], strides = [1, 1]} : vector<8x64xf32> to vector<8x16xf32>
    %448 = arith.negf %447 : vector<8x16xf32>
    %449 = math.exp %448 : vector<8x16xf32>
    %cst_81 = arith.constant 1.000000e+00 : f32
    %450 = vector.broadcast %cst_81 : f32 to vector<8x16xf32>
    %451 = arith.addf %450, %449 : vector<8x16xf32>
    %452 = arith.divf %450, %451 : vector<8x16xf32>
    %453 = vector.extract_strided_slice %440 {offsets = [0, 32], sizes = [8, 16], strides = [1, 1]} : vector<8x64xf32> to vector<8x16xf32>
    %454 = math.tanh %453 : vector<8x16xf32>
    %455 = vector.extract_strided_slice %440 {offsets = [0, 48], sizes = [8, 16], strides = [1, 1]} : vector<8x64xf32> to vector<8x16xf32>
    %456 = arith.negf %455 : vector<8x16xf32>
    %457 = math.exp %456 : vector<8x16xf32>
    %cst_82 = arith.constant 1.000000e+00 : f32
    %458 = vector.broadcast %cst_82 : f32 to vector<8x16xf32>
    %459 = arith.addf %458, %457 : vector<8x16xf32>
    %460 = arith.divf %458, %459 : vector<8x16xf32>
    %461 = arith.mulf %452, %435 : vector<8x16xf32>
    %462 = arith.mulf %446, %454 : vector<8x16xf32>
    %463 = arith.addf %461, %462 : vector<8x16xf32>
    %464 = math.tanh %463 : vector<8x16xf32>
    %465 = arith.mulf %460, %464 : vector<8x16xf32>
    %466 = tpu.concatenate %42, %70, %98, %126, %154, %182, %210, %238 in 0 : vector<8x16xf32>, vector<8x16xf32>, vector<8x16xf32>, vector<8x16xf32>, vector<8x16xf32>, vector<8x16xf32>, vector<8x16xf32>, vector<8x16xf32> -> vector<64x16xf32>
    %467 = tpu.concatenate %465, %437, %409, %381, %353, %325, %297, %269 in 0 : vector<8x16xf32>, vector<8x16xf32>, vector<8x16xf32>, vector<8x16xf32>, vector<8x16xf32>, vector<8x16xf32>, vector<8x16xf32>, vector<8x16xf32> -> vector<64x16xf32>
    %468 = tpu.concatenate %466, %467 in 1 : vector<64x16xf32>, vector<64x16xf32> -> vector<64x32xf32>
    %c0_83 = arith.constant 0 : index
    %c0_84 = arith.constant 0 : index
    %469 = vector.load %arg8[%c0_83, %c0_84] : memref<128x32xf32, #tpu.memory_space<vmem>>, vector<128x32xf32>
    %c0_85 = arith.constant 0 : index
    %c0_86 = arith.constant 0 : index
    %470 = vector.load %arg9[%c0_85, %c0_86] : memref<1x32xf32, #tpu.memory_space<vmem>>, vector<1x32xf32>
    %471 = vector.extract_strided_slice %468 {offsets = [0, 0], sizes = [40, 32], strides = [1, 1]} : vector<64x32xf32> to vector<40x32xf32>
    %472 = vector.extract_strided_slice %468 {offsets = [8, 0], sizes = [40, 32], strides = [1, 1]} : vector<64x32xf32> to vector<40x32xf32>
    %473 = vector.extract_strided_slice %468 {offsets = [16, 0], sizes = [40, 32], strides = [1, 1]} : vector<64x32xf32> to vector<40x32xf32>
    %474 = vector.extract_strided_slice %468 {offsets = [24, 0], sizes = [40, 32], strides = [1, 1]} : vector<64x32xf32> to vector<40x32xf32>
    %475 = tpu.concatenate %471, %472, %473, %474 in 1 : vector<40x32xf32>, vector<40x32xf32>, vector<40x32xf32>, vector<40x32xf32> -> vector<40x128xf32>
    %cst_87 = arith.constant dense<0.000000e+00> : vector<40x32xf32>
    %476 = tpu.matmul %475, %469, %cst_87 {dimension_numbers = #tpu.dot_dimension_numbers<[1], [0], [0], [1], [0, 0, 1, 1], [], []>} : vector<40x128xf32>, vector<128x32xf32>, vector<40x32xf32> -> vector<40x32xf32>
    %477 = vector.broadcast %470 : vector<1x32xf32> to vector<40x32xf32>
    %478 = arith.addf %476, %477 : vector<40x32xf32>
    %cst_88 = arith.constant 0.000000e+00 : f32
    %479 = vector.broadcast %cst_88 : f32 to vector<40x32xf32>
    %480 = arith.maximumf %478, %479 : vector<40x32xf32>
    %481 = vector.shape_cast %480 : vector<40x32xf32> to vector<5x8x32xf32>
    %cst_89 = arith.constant dense<0xFF800000> : vector<8x32xf32>
    %482 = vector.multi_reduction <maximumf>, %481, %cst_89 [0] : vector<5x8x32xf32> to vector<8x32xf32>
    %c0_90 = arith.constant 0 : index
    %c0_91 = arith.constant 0 : index
    %483 = vector.load %arg10[%c0_90, %c0_91] : memref<160x32xf32, #tpu.memory_space<vmem>>, vector<160x32xf32>
    %c0_92 = arith.constant 0 : index
    %c0_93 = arith.constant 0 : index
    %484 = vector.load %arg11[%c0_92, %c0_93] : memref<1x32xf32, #tpu.memory_space<vmem>>, vector<1x32xf32>
    %485 = vector.extract_strided_slice %468 {offsets = [0, 0], sizes = [32, 32], strides = [1, 1]} : vector<64x32xf32> to vector<32x32xf32>
    %486 = vector.extract_strided_slice %468 {offsets = [8, 0], sizes = [32, 32], strides = [1, 1]} : vector<64x32xf32> to vector<32x32xf32>
    %487 = vector.extract_strided_slice %468 {offsets = [16, 0], sizes = [32, 32], strides = [1, 1]} : vector<64x32xf32> to vector<32x32xf32>
    %488 = vector.extract_strided_slice %468 {offsets = [24, 0], sizes = [32, 32], strides = [1, 1]} : vector<64x32xf32> to vector<32x32xf32>
    %489 = vector.extract_strided_slice %468 {offsets = [32, 0], sizes = [32, 32], strides = [1, 1]} : vector<64x32xf32> to vector<32x32xf32>
    %490 = tpu.concatenate %485, %486, %487, %488, %489 in 1 : vector<32x32xf32>, vector<32x32xf32>, vector<32x32xf32>, vector<32x32xf32>, vector<32x32xf32> -> vector<32x160xf32>
    %cst_94 = arith.constant dense<0.000000e+00> : vector<32x32xf32>
    %491 = tpu.matmul %490, %483, %cst_94 {dimension_numbers = #tpu.dot_dimension_numbers<[1], [0], [0], [1], [0, 0, 1, 1], [], []>} : vector<32x160xf32>, vector<160x32xf32>, vector<32x32xf32> -> vector<32x32xf32>
    %492 = vector.broadcast %484 : vector<1x32xf32> to vector<32x32xf32>
    %493 = arith.addf %491, %492 : vector<32x32xf32>
    %cst_95 = arith.constant 0.000000e+00 : f32
    %494 = vector.broadcast %cst_95 : f32 to vector<32x32xf32>
    %495 = arith.maximumf %493, %494 : vector<32x32xf32>
    %496 = vector.shape_cast %495 : vector<32x32xf32> to vector<4x8x32xf32>
    %cst_96 = arith.constant dense<0xFF800000> : vector<8x32xf32>
    %497 = vector.multi_reduction <maximumf>, %496, %cst_96 [0] : vector<4x8x32xf32> to vector<8x32xf32>
    %498 = tpu.concatenate %482, %497 in 1 : vector<8x32xf32>, vector<8x32xf32> -> vector<8x64xf32>
    %c0_97 = arith.constant 0 : index
    %c0_98 = arith.constant 0 : index
    %499 = vector.load %arg12[%c0_97, %c0_98] : memref<64x128xf32, #tpu.memory_space<vmem>>, vector<64x128xf32>
    %cst_99 = arith.constant dense<0.000000e+00> : vector<8x128xf32>
    %500 = tpu.matmul %498, %499, %cst_99 {dimension_numbers = #tpu.dot_dimension_numbers<[1], [0], [0], [1], [0, 0, 1, 1], [], []>} : vector<8x64xf32>, vector<64x128xf32>, vector<8x128xf32> -> vector<8x128xf32>
    %c0_100 = arith.constant 0 : index
    %c0_101 = arith.constant 0 : index
    %501 = vector.load %arg13[%c0_100, %c0_101] : memref<1x128xf32, #tpu.memory_space<vmem>>, vector<1x128xf32>
    %502 = vector.broadcast %501 : vector<1x128xf32> to vector<8x128xf32>
    %503 = arith.addf %500, %502 : vector<8x128xf32>
    %c0_102 = arith.constant 0 : index
    %c0_103 = arith.constant 0 : index
    %504 = vector.load %arg14[%c0_102, %c0_103] : memref<8x128xf32, #tpu.memory_space<vmem>>, vector<8x128xf32>
    tpu.vector_store %arg14[%c0_102, %c0_103], %503 {strides = array<i32>} : memref<8x128xf32, #tpu.memory_space<vmem>>, vector<8x128xf32>,
    return
  }
  func.func @transform_0(%arg0: i32) -> (i32, i32, i32) {
    %c0_i32 = arith.constant 0 : i32
    %c0_i32_0 = arith.constant 0 : i32
    %c0_i32_1 = arith.constant 0 : i32
    return %c0_i32, %arg0, %c0_i32_0 : i32, i32, i32
  }
  func.func @transform_1(%arg0: i32) -> (i32, i32) {
    %c0_i32 = arith.constant 0 : i32
    %c0_i32_0 = arith.constant 0 : i32
    %c0_i32_1 = arith.constant 0 : i32
    return %c0_i32, %c0_i32_0 : i32, i32
  }
  func.func @transform_2(%arg0: i32) -> (i32, i32) {
    %c0_i32 = arith.constant 0 : i32
    %c0_i32_0 = arith.constant 0 : i32
    %c0_i32_1 = arith.constant 0 : i32
    return %c0_i32, %c0_i32_0 : i32, i32
  }
  func.func @transform_3(%arg0: i32) -> (i32, i32) {
    %c0_i32 = arith.constant 0 : i32
    %c0_i32_0 = arith.constant 0 : i32
    %c0_i32_1 = arith.constant 0 : i32
    return %c0_i32, %c0_i32_0 : i32, i32
  }
  func.func @transform_4(%arg0: i32) -> (i32, i32) {
    %c0_i32 = arith.constant 0 : i32
    %c0_i32_0 = arith.constant 0 : i32
    %c0_i32_1 = arith.constant 0 : i32
    return %c0_i32, %c0_i32_0 : i32, i32
  }
  func.func @transform_5(%arg0: i32) -> (i32, i32) {
    %c0_i32 = arith.constant 0 : i32
    %c0_i32_0 = arith.constant 0 : i32
    %c0_i32_1 = arith.constant 0 : i32
    return %c0_i32, %c0_i32_0 : i32, i32
  }
  func.func @transform_6(%arg0: i32) -> (i32, i32) {
    %c0_i32 = arith.constant 0 : i32
    %c0_i32_0 = arith.constant 0 : i32
    %c0_i32_1 = arith.constant 0 : i32
    return %c0_i32, %c0_i32_0 : i32, i32
  }
  func.func @transform_7(%arg0: i32) -> (i32, i32) {
    %c0_i32 = arith.constant 0 : i32
    %c0_i32_0 = arith.constant 0 : i32
    %c0_i32_1 = arith.constant 0 : i32
    return %c0_i32, %c0_i32_0 : i32, i32
  }
  func.func @transform_8(%arg0: i32) -> (i32, i32) {
    %c0_i32 = arith.constant 0 : i32
    %c0_i32_0 = arith.constant 0 : i32
    %c0_i32_1 = arith.constant 0 : i32
    return %c0_i32, %c0_i32_0 : i32, i32
  }
  func.func @transform_9(%arg0: i32) -> (i32, i32) {
    %c0_i32 = arith.constant 0 : i32
    %c0_i32_0 = arith.constant 0 : i32
    %c0_i32_1 = arith.constant 0 : i32
    return %c0_i32, %c0_i32_0 : i32, i32
  }
  func.func @transform_10(%arg0: i32) -> (i32, i32) {
    %c0_i32 = arith.constant 0 : i32
    %c0_i32_0 = arith.constant 0 : i32
    %c0_i32_1 = arith.constant 0 : i32
    return %c0_i32, %c0_i32_0 : i32, i32
  }
  func.func @transform_11(%arg0: i32) -> (i32, i32) {
    %c0_i32 = arith.constant 0 : i32
    %c0_i32_0 = arith.constant 0 : i32
    %c0_i32_1 = arith.constant 0 : i32
    return %c0_i32, %c0_i32_0 : i32, i32
  }
  func.func @transform_12(%arg0: i32) -> (i32, i32) {
    %c0_i32 = arith.constant 0 : i32
    %c0_i32_0 = arith.constant 0 : i32
    %c0_i32_1 = arith.constant 0 : i32
    return %c0_i32, %c0_i32_0 : i32, i32
  }
  func.func @transform_13(%arg0: i32) -> (i32, i32) {
    %c0_i32 = arith.constant 0 : i32
    %c0_i32_0 = arith.constant 0 : i32
    return %arg0, %c0_i32 : i32, i32
  }
}

</mosaic_0001>

<bundles_post_ra>
// kernel: tpu_custom_call.1
= control target key start
LH: loop header
LB: loop body
LE: loop exit
PB: predicated region body
PF: predicated region fallthrough
CT: control target
= control target key end

     0   :  { %vm64_vm0 = vcmask 261120   ;;  %s3806_s0 = inlined_call_operand.vmem [shape: f32[8,8,32], index: 0, kind: input, shape index: {}]   ;;  %s3807_s1 = inlined_call_operand.vmem [shape: f32[32,64], index: 1, kind: input, shape index: {}]   ;;  %s3808_s2 = inlined_call_operand.vmem [shape: f32[16,64], index: 2, kind: input, shape index: {}]   ;;  %s3809_s3 = inlined_call_operand.vmem [shape: f32[1,64], index: 3, kind: input, shape index: {}]   ;;  %s3810_s4 = inlined_call_operand.vmem [shape: f32[32,64], index: 4, kind: input, shape index: {}]   ;;  %s3811_s5 = inlined_call_operand.vmem [shape: f32[16,64], index: 5, kind: input, shape index: {}]   ;;  %s3812_s6 = inlined_call_operand.vmem [shape: f32[1,64], index: 6, kind: input, shape index: {}]   ;;  %s3813_s7 = inlined_call_operand.vmem [shape: f32[128,32], index: 7, kind: input, shape index: {}]   ;;  %s3814_s8 = inlined_call_operand.vmem [shape: f32[1,32], index: 8, kind: input, shape index: {}]   ;;  %s3815_s9 = inlined_call_operand.vmem [shape: f32[160,32], index: 9, kind: input, shape index: {}]   ;;  %s3816_s10 = inlined_call_operand.vmem [shape: f32[1,32], index: 10, kind: input, shape index: {}]   ;;  %s3817_s11 = inlined_call_operand.vmem [shape: f32[64,128], index: 11, kind: input, shape index: {}]   ;;  %s3818_s12 = inlined_call_operand.vmem [shape: f32[1,128], index: 12, kind: input, shape index: {}]   ;;  %s3819_s13 = inlined_call_operand.hbm [shape: f32[8,128], index: 13, kind: output, shape index: {}]  }
   0x1   :  { %v53_v0 = vld [vmem:[%s3807_s1] sm:$0xff]  ;;  %v54_v1 = vld [vmem:[%s3807_s1 + $0x8] sm:$0xff]  ;;  %v55_v2 = vld [vmem:[%s3807_s1 + $0x10] sm:$0xff] }
   0x2   :  { %v2763_v3 = vpack.c.bf16 %v54_v1, %v53_v0  ;;  %v56_v4 = vld [vmem:[%s3807_s1 + $0x18] sm:$0xff]  ;;  %v45_v5 = vld [vmem:[%s3806_s0] sm:$0xff] }
   0x3   :  { %v2767_v6 = vpack.c.bf16 %v56_v4, %v55_v2  ;;  %2553 = vmatprep.mubr.msk.f32.mxu0 %vm64_vm0, %v45_v5  ;;  %2573 = vmatprep.mubr.msk.f32.mxu1 %vm64_vm0, %v45_v5 }
   0x4   :  { %2764 = vmatprep.subr.bf16.mxu0 %v2763_v3 }
   0x5   :  { %2766 = vmatpush3.bf16.msra.mxu0 %v2763_v3 }
   0x6   :  { %18 = vsyncpa [#allocation3], 0  ;;  %2768 = vmatprep.subr.bf16.mxu0 %v2767_v6  ;;  %v310_v7 = vld [vmem:[%s3808_s2] sm:$0xff]  ;;  %v311_v8 = vld [vmem:[%s3808_s2 + $0x8] sm:$0xff]  ;;  %v3079_v11 = vmov 0.0|0.0   ;;  %vm3080_vm1 = vmmov 0  }
   0x7   :  { %v3184_v9 = vld [vmem:[%s3806_s0 + $0x8] sm:$0xff]  ;;  %v3186_v10 = vpack.c.bf16 %v311_v8, %v310_v7  ;;  %v3192_v12 = vld [vmem:[%s3806_s0 + $0x10] sm:$0xff]  ;;  %v3202_v13 = vld [vmem:[%s3806_s0 + $0x18] sm:$0xff]  ;;  %v3081_v18 = vmov 0.0   ;;  %s3083_s18 = smov 16   ;;  %s3084_s25 = smov 32  }
   0x8   :  { %v3207_v14 = vld [vmem:[%s3806_s0 + $0x20] sm:$0xff]  ;;  %v3217_v15 = vld [vmem:[%s3806_s0 + $0x28] sm:$0xff]  ;;  %v3222_v16 = vld [vmem:[%s3806_s0 + $0x30] sm:$0xff]  ;;  %vm312_vm2 = vcmask 130048   ;;  %vm2026_vm3 = vcmask 523264   ;;  %vm2032_vm4 = vcmask 785408  }
   0x9   :  { %2770 = vmatpush3.bf16.msra.mxu0 %v2767_v6  ;;  %v3231_v17 = vld [vmem:[%s3806_s0 + $0x38] sm:$0xff]  ;;  %v2387_v19 = vld [vmem:[%s3809_s3] ss:$0 sm:$0xff]  ;;  %s3082_s3 = smov 96   ;;  %v195_v50 = vld [vmem:[%s3810_s4 + $0x8] sm:$0xff] }
   0xa   :  { %2779 = vmatprep.subr.bf16.mxu0 %v3079_v11  ;;  %v194_v49 = vld [vmem:[%s3810_s4] sm:$0xff]  ;;  %v196_v51 = vld [vmem:[%s3810_s4 + $0x10] sm:$0xff]  ;;  %v197_v53 = vld [vmem:[%s3810_s4 + $0x18] sm:$0xff]  ;;  %s3085_s4 = smov 80  }
   0xb   :  { %v2771_v52 = vpack.c.bf16 %v195_v50, %v194_v49  ;;  %v2775_v54 = vpack.c.bf16 %v197_v53, %v196_v51  ;;  %v3300_v58 = vld [vmem:[%s3812_s6] ss:$0 sm:$0xff] }
   0xc   :  { %2554 = vmatmul.mubr.msk.f32.vlgmr.msra.gmra.mrb[0].mxu0 %vm64_vm0, %v3184_v9 }
   0xd   :  { %2781 = vmatpush3.bf16.msra.mxu0 %v3186_v10  ;;  %2556 = vmatprep.mubr.msk.f32.mxu0 %vm64_vm0, %v3192_v12 }
   0xe   :  { %2785 = vmatprep.subr.bf16.mxu0 %v3079_v11  ;;  %2772 = vmatprep.subr.bf16.mxu1 %v2771_v52 }
   0xf   :  { %2774 = vmatpush3.bf16.msra.mxu1 %v2771_v52 }
  0x10   :  { %2557 = vmatmul.mubr.msk.f32.gmra.mrb[2].mxu0 %vm64_vm0, %v3202_v13  ;;  %2776 = vmatprep.subr.bf16.mxu1 %v2775_v54 }
  0x11   :  { %2559 = vmatprep.mubr.msk.f32.mxu0 %vm64_vm0, %v3207_v14 }
  0x13   :  { %2778 = vmatpush3.bf16.msra.mxu1 %v2775_v54 }
  0x14   :  { %2560 = vmatmul.mubr.msk.f32.gmra.mrb[4].mxu0 %vm64_vm0, %v3217_v15  ;;  %2782 = vmatprep.subr.bf16.mxu1 %v3079_v11 }
  0x15   :  { %2562 = vmatprep.mubr.msk.f32.mxu0 %vm64_vm0, %v3222_v16 }
  0x16   :  { %2574 = vmatmul.mubr.msk.f32.vlgmr.msra.gmra.mrb[0].mxu1 %vm64_vm0, %v3184_v9 }
  0x17   :  { %2784 = vmatpush3.bf16.msra.mxu1 %v3186_v10  ;;  %2576 = vmatprep.mubr.msk.f32.mxu1 %vm64_vm0, %v3192_v12 }
  0x18   :  { %2563 = vmatmul.mubr.msk.f32.gmra.mrb[6].mxu0 %vm64_vm0, %v3231_v17  ;;  %2788 = vmatprep.subr.bf16.mxu1 %v3079_v11 }
  0x19   :  { %2589 = vmatprep.mubr.msk.f32.mxu0 %vm3080_vm1, %v3081_v18 }
  0x1a   :  { %2577 = vmatmul.mubr.msk.f32.gmra.mrb[2].mxu1 %vm64_vm0, %v3202_v13 }
  0x1b   :  { %2579 = vmatprep.mubr.msk.f32.mxu1 %vm64_vm0, %v3207_v14 }
  0x1c   :  { %2590 = vmatmul.mubr.f32.vlgmr.msra.gmra.mrb[8].mxu0 %v3081_v18 }
  0x1d   :  { %2787 = vmatpush3.bf16.msra.mxu0 %v3186_v10  ;;  %2603 = vmatprep.mubr.msk.f32.mxu0 %vm3080_vm1, %v3081_v18 }
  0x1e   :  { %2791 = vmatprep.subr.bf16.mxu0 %v3079_v11  ;;  %2580 = vmatmul.mubr.msk.f32.gmra.mrb[4].mxu1 %vm64_vm0, %v3217_v15 }
  0x1f   :  { %2582 = vmatprep.mubr.msk.f32.mxu1 %vm64_vm0, %v3222_v16 }
  0x22   :  { %2583 = vmatmul.mubr.msk.f32.gmra.mrb[6].mxu1 %vm64_vm0, %v3231_v17 }
  0x23   :  { %2596 = vmatprep.mubr.msk.f32.mxu1 %vm3080_vm1, %v3081_v18 }
  0xdf   :  { %v2555_v20 = vpop.f32.mrb[0].mxu0 }
  0xe0   :  { %v3245_v21 = vadd.f32 %v2555_v20, %v2387_v19  ;;  %v155_v22 = vpop.f32.mrb[1].mxu0 }
  0xe1   :  { %v156_v35 = vadd.f32 %v2387_v19, %v155_v22 }
  0xe3   :  { %v2558_v23 = vpop.f32.mrb[2].mxu0 }
  0xe4   :  { %v3247_v24 = vadd.f32 %v2558_v23, %v2387_v19  ;;  %v165_v25 = vpop.f32.mrb[3].mxu0 }
  0xe5   :  { %v3249_v26 = vadd.f32 %v2387_v19, %v165_v25 }
  0xe7   :  { %v2561_v27 = vpop.f32.mrb[4].mxu0 }
  0xe8   :  { %v3251_v28 = vadd.f32 %v2561_v27, %v2387_v19  ;;  %v175_v29 = vpop.f32.mrb[5].mxu0 }
  0xe9   :  { %v3253_v30 = vadd.f32 %v2387_v19, %v175_v29  ;;  %v2575_v59 = vpop.f32.mrb[0].mxu1 }
  0xea   :  { %v3303_v60 = vadd.f32 %v2575_v59, %v3300_v58  ;;  %v271_v61 = vpop.f32.mrb[1].mxu1 }
  0xeb   :  { %v2564_v31 = vpop.f32.mrb[6].mxu0  ;;  %v3306_v62 = vadd.f32 %v3300_v58, %v271_v61 }
  0xec   :  { %v3255_v32 = vadd.f32 %v2564_v31, %v2387_v19  ;;  %v185_v33 = vpop.f32.mrb[7].mxu0 }
  0xed   :  { %v3257_v34 = vadd.f32 %v2387_v19, %v185_v33  ;;  %v2578_v63 = vpop.f32.mrb[2].mxu1 }
  0xee   :  { %v3309_v0 = vadd.f32 %v2578_v63, %v3300_v58  ;;  %v281_v1 = vpop.f32.mrb[3].mxu1 }
  0xef   :  { %v382_v36 = vpop.f32.mrb[8].mxu0  ;;  %v3312_v2 = vadd.f32 %v3300_v58, %v281_v1 }
  0xf0   :  { %v386_v37 = vadd.f32 %v382_v36, %v156_v35  ;;  %v2591_v38 = vpop.f32.mrb[9].mxu0 }
  0xf1   :  { %v2581_v3 = vpop.f32.mrb[4].mxu1 }
  0xf2   :  { %2927 = vtanh.f32 %v386_v37  ;;  %v2405_v40 = vmul.f32 -1.442695, %v386_v37  ;;  %v3315_v4 = vadd.f32 %v2581_v3, %v3300_v58  ;;  %v291_v5 = vpop.f32.mrb[5].mxu1 }
  0xf3   :  { %v3318_v6 = vadd.f32 %v3300_v58, %v291_v5 }
  0xf4   :  { %2929 = vpow2.f32 %v2405_v40 }
  0xf5   :  { %v3320_v7 = vpop.f32.mrb[6].mxu1 }
  0xf6   :  { %v301_v8 = vpop.f32.mrb[7].mxu1 }
  0xf7   :  { %v3323_v9 = vadd.f32 %v3300_v58, %v301_v8 }
  0xfc   :  { %v2928_v39 = vpop.eup %2927 }
  0xfd   :  { %396 = vrot.lane.b32.xlu0 %v2928_v39, %s3082_s3 }
  0xfe   :  { %v2930_v41 = vpop.eup %2929 }
  0xff   :  { %v390_v42 = vadd.f32 1.0, %v2930_v41 }
 0x101   :  { %2931 = vrcp.f32 %v390_v42 }
 0x10b   :  { %v2932_v43 = vpop.eup %2931 }
 0x10c   :  { %v394_v46 = vmul.f32 0.0, %v2932_v43 }
 0x16f   :  { %v397_v44 = vpop.permute.xlu0 %396 }
 0x170   :  { %v399_v45 = vmul.f32 %v2932_v43, %v397_v44 }
 0x172   :  { %401 = vrot.lane.b32.xlu0 %v399_v45, %s3083_s18 }
 0x1e4   :  { %v402_v47 = vpop.permute.xlu0 %401 }
 0x1e5   :  { %v3261_v48 = vadd.f32 %v402_v47, %v394_v46 }
 0x1e7   :  { %2933 = vtanh.f32 %v3261_v48 }
 0x1f1   :  { %v2934_v55 = vpop.eup %2933 }
 0x1f2   :  { %407 = vrot.lane.b32.xlu1 %v2934_v55, %s3084_s25 }
 0x264   :  { %v408_v56 = vpop.permute.xlu1 %407 }
 0x265   :  { %v410_v57 = vmul.f32 %v2932_v43, %v408_v56 }
 0x267   :  { %412 = vrot.lane.b32.xlu1 %v410_v57, %s3085_s4 }
 0x2d9   :  { %v3325_v12 = vpop.permute.xlu1 %412 }
 0x2da   :  { %2597 = vmatmul.mubr.msk.f32.vlgmr.msra.gmra.mrb[8].mxu1 %vm312_vm2, %v3325_v12 }
 0x2db   :  { %2790 = vmatpush3.bf16.msra.mxu1 %v3186_v10  ;;  %2610 = vmatprep.mubr.msk.f32.mxu1 %vm3080_vm1, %v3081_v18 }
 0x2dc   :  { %2794 = vmatprep.subr.bf16.mxu1 %v3079_v11 }
 0x3ad   :  { %v482_v13 = vpop.f32.mrb[8].mxu1 }
 0x3ae   :  { %v486_v14 = vadd.f32 %v482_v13, %v3245_v21  ;;  %v2598_v15 = vpop.f32.mrb[9].mxu1 }
 0x3b0   :  { %2935 = vtanh.f32 %v486_v14  ;;  %v2407_v17 = vmul.f32 -1.442695, %v486_v14 }
 0x3b2   :  { %2937 = vpow2.f32 %v2407_v17 }
 0x3ba   :  { %v2936_v16 = vpop.eup %2935 }
 0x3bb   :  { %496 = vrot.lane.b32.xlu0 %v2936_v16, %s3082_s3 }
 0x3bc   :  { %v2938_v19 = vpop.eup %2937 }
 0x3bd   :  { %v490_v20 = vadd.f32 1.0, %v2938_v19 }
 0x3bf   :  { %2939 = vrcp.f32 %v490_v20 }
 0x3c9   :  { %v2940_v22 = vpop.eup %2939 }
 0x3ca   :  { %v494_v27 = vmul.f32 %v2940_v22, %v3261_v48 }
 0x42d   :  { %v497_v23 = vpop.permute.xlu0 %496 }
 0x42e   :  { %v499_v25 = vmul.f32 %v2940_v22, %v497_v23 }
 0x430   :  { %501 = vrot.lane.b32.xlu1 %v499_v25, %s3083_s18 }
 0x4a2   :  { %v502_v29 = vpop.permute.xlu1 %501 }
 0x4a3   :  { %v504_v31 = vadd.f32 %v502_v29, %v494_v27 }
 0x4a5   :  { %2941 = vtanh.f32 %v504_v31 }
 0x4af   :  { %v2942_v21 = vpop.eup %2941 }
 0x4b0   :  { %507 = vrot.lane.b32.xlu0 %v2942_v21, %s3084_s25 }
 0x522   :  { %v508_v33 = vpop.permute.xlu0 %507 }
 0x523   :  { %v510_v35 = vmul.f32 %v2940_v22, %v508_v33 }
 0x525   :  { %512 = vrot.lane.b32.xlu1 %v510_v35, %s3085_s4 }
 0x597   :  { %v3339_v36 = vpop.permute.xlu1 %512 }
 0x598   :  { %2604 = vmatmul.mubr.msk.f32.vlgmr.msra.gmra.mrb[10].mxu0 %vm312_vm2, %v3339_v36 }
 0x599   :  { %2793 = vmatpush3.bf16.msra.mxu0 %v3186_v10  ;;  %2617 = vmatprep.mubr.msk.f32.mxu0 %vm3080_vm1, %v3081_v18 }
 0x59a   :  { %2797 = vmatprep.subr.bf16.mxu0 %v3079_v11 }
 0x66b   :  { %v582_v37 = vpop.f32.mrb[10].mxu0 }
 0x66c   :  { %v586_v38 = vadd.f32 %v582_v37, %v3249_v26  ;;  %v2605_v39 = vpop.f32.mrb[11].mxu0 }
 0x66e   :  { %2943 = vtanh.f32 %v586_v38  ;;  %v2409_v41 = vmul.f32 -1.442695, %v586_v38 }
 0x670   :  { %2945 = vpow2.f32 %v2409_v41 }
 0x678   :  { %v2944_v40 = vpop.eup %2943 }
 0x679   :  { %596 = vrot.lane.b32.xlu0 %v2944_v40, %s3082_s3 }
 0x67a   :  { %v2946_v42 = vpop.eup %2945 }
 0x67b   :  { %v590_v43 = vadd.f32 1.0, %v2946_v42 }
 0x67d   :  { %2947 = vrcp.f32 %v590_v43 }
 0x687   :  { %v2948_v44 = vpop.eup %2947 }
 0x688   :  { %v594_v47 = vmul.f32 %v2948_v44, %v504_v31 }
 0x6eb   :  { %v597_v45 = vpop.permute.xlu0 %596 }
 0x6ec   :  { %v599_v46 = vmul.f32 %v2948_v44, %v597_v45 }
 0x6ee   :  { %601 = vrot.lane.b32.xlu1 %v599_v46, %s3083_s18 }
 0x760   :  { %v602_v48 = vpop.permute.xlu1 %601 }
 0x761   :  { %v604_v49 = vadd.f32 %v602_v48, %v594_v47 }
 0x763   :  { %2949 = vtanh.f32 %v604_v49 }
 0x76d   :  { %v2950_v26 = vpop.eup %2949 }
 0x76e   :  { %607 = vrot.lane.b32.xlu0 %v2950_v26, %s3084_s25 }
 0x7e0   :  { %v608_v50 = vpop.permute.xlu0 %607 }
 0x7e1   :  { %v610_v51 = vmul.f32 %v2948_v44, %v608_v50 }
 0x7e3   :  { %612 = vrot.lane.b32.xlu1 %v610_v51, %s3085_s4 }
 0x855   :  { %v3352_v52 = vpop.permute.xlu1 %612 }
 0x856   :  { %2611 = vmatmul.mubr.msk.f32.vlgmr.msra.gmra.mrb[10].mxu1 %vm312_vm2, %v3352_v52 }
 0x857   :  { %2796 = vmatpush3.bf16.msra.mxu1 %v3186_v10  ;;  %2624 = vmatprep.mubr.msk.f32.mxu1 %vm3080_vm1, %v3081_v18 }
 0x858   :  { %2800 = vmatprep.subr.bf16.mxu1 %v3079_v11 }
 0x929   :  { %v682_v53 = vpop.f32.mrb[10].mxu1 }
 0x92a   :  { %v686_v54 = vadd.f32 %v682_v53, %v3247_v24  ;;  %v2612_v55 = vpop.f32.mrb[11].mxu1 }
 0x92b   :  { %v1111_v55 = vld [vmem:[%s3811_s5] sm:$0xff] }
 0x92c   :  { %2951 = vtanh.f32 %v686_v54  ;;  %v2411_v57 = vmul.f32 -1.442695, %v686_v54 }
 0x92e   :  { %2953 = vpow2.f32 %v2411_v57 }
 0x936   :  { %v2952_v56 = vpop.eup %2951 }
 0x937   :  { %696 = vrot.lane.b32.xlu0 %v2952_v56, %s3082_s3  ;;  %v1112_v56 = vld [vmem:[%s3811_s5 + $0x8] sm:$0xff] }
 0x938   :  { %v2954_v59 = vpop.eup %2953  ;;  %v3397_v57 = vpack.c.bf16 %v1112_v56, %v1111_v55 }
 0x939   :  { %v690_v61 = vadd.f32 1.0, %v2954_v59 }
 0x93b   :  { %2955 = vrcp.f32 %v690_v61 }
 0x945   :  { %v2956_v63 = vpop.eup %2955 }
 0x946   :  { %v694_v5 = vmul.f32 %v2956_v63, %v604_v49 }
 0x9a9   :  { %v697_v1 = vpop.permute.xlu0 %696 }
 0x9aa   :  { %v699_v3 = vmul.f32 %v2956_v63, %v697_v1 }
 0x9ac   :  { %701 = vrot.lane.b32.xlu1 %v699_v3, %s3083_s18  ;;  %v307_v3 = vadd.f32 %v3320_v7, %v3300_v58 }
 0xa1e   :  { %v702_v8 = vpop.permute.xlu1 %701 }
 0xa1f   :  { %v704_v13 = vadd.f32 %v702_v8, %v694_v5 }
 0xa21   :  { %2957 = vtanh.f32 %v704_v13 }
 0xa2b   :  { %v2958_v24 = vpop.eup %2957 }
 0xa2c   :  { %707 = vrot.lane.b32.xlu0 %v2958_v24, %s3084_s25 }
 0xa9e   :  { %v708_v14 = vpop.permute.xlu0 %707 }
 0xa9f   :  { %v710_v15 = vmul.f32 %v2956_v63, %v708_v14 }
 0xaa1   :  { %712 = vrot.lane.b32.xlu1 %v710_v15, %s3085_s4 }
 0xb13   :  { %v3365_v16 = vpop.permute.xlu1 %712 }
 0xb14   :  { %2618 = vmatmul.mubr.msk.f32.vlgmr.msra.gmra.mrb[12].mxu0 %vm312_vm2, %v3365_v16 }
 0xb15   :  { %2799 = vmatpush3.bf16.msra.mxu0 %v3186_v10  ;;  %2631 = vmatprep.mubr.msk.f32.mxu0 %vm3080_vm1, %v3081_v18 }
 0xb16   :  { %2803 = vmatprep.subr.bf16.mxu0 %v3079_v11 }
 0xbe7   :  { %v782_v17 = vpop.f32.mrb[12].mxu0 }
 0xbe8   :  { %v786_v19 = vadd.f32 %v782_v17, %v3253_v30  ;;  %v2619_v20 = vpop.f32.mrb[13].mxu0 }
 0xbea   :  { %2959 = vtanh.f32 %v786_v19  ;;  %v2413_v23 = vmul.f32 -1.442695, %v786_v19 }
 0xbec   :  { %2961 = vpow2.f32 %v2413_v23 }
 0xbf4   :  { %v2960_v22 = vpop.eup %2959 }
 0xbf5   :  { %796 = vrot.lane.b32.xlu0 %v2960_v22, %s3082_s3 }
 0xbf6   :  { %v2962_v25 = vpop.eup %2961 }
 0xbf7   :  { %v790_v27 = vadd.f32 1.0, %v2962_v25 }
 0xbf9   :  { %2963 = vrcp.f32 %v790_v27 }
 0xc03   :  { %v2964_v29 = vpop.eup %2963 }
 0xc04   :  { %v794_v33 = vmul.f32 %v2964_v29, %v704_v13 }
 0xc67   :  { %v797_v31 = vpop.permute.xlu0 %796 }
 0xc68   :  { %v799_v21 = vmul.f32 %v2964_v29, %v797_v31 }
 0xc6a   :  { %801 = vrot.lane.b32.xlu1 %v799_v21, %s3083_s18 }
 0xcdc   :  { %v802_v35 = vpop.permute.xlu1 %801 }
 0xcdd   :  { %v804_v37 = vadd.f32 %v802_v35, %v794_v33 }
 0xcdf   :  { %2965 = vtanh.f32 %v804_v37 }
 0xce9   :  { %v2966_v30 = vpop.eup %2965 }
 0xcea   :  { %807 = vrot.lane.b32.xlu0 %v2966_v30, %s3084_s25 }
 0xd5c   :  { %v808_v38 = vpop.permute.xlu0 %807 }
 0xd5d   :  { %v810_v39 = vmul.f32 %v2964_v29, %v808_v38 }
 0xd5f   :  { %812 = vrot.lane.b32.xlu1 %v810_v39, %s3085_s4 }
 0xdd1   :  { %v3378_v40 = vpop.permute.xlu1 %812 }
 0xdd2   :  { %2625 = vmatmul.mubr.msk.f32.vlgmr.msra.gmra.mrb[12].mxu1 %vm312_vm2, %v3378_v40 }
 0xdd3   :  { %2802 = vmatpush3.bf16.msra.mxu1 %v3186_v10  ;;  %2638 = vmatprep.mubr.msk.f32.mxu1 %vm3080_vm1, %v3081_v18 }
 0xdd4   :  { %2806 = vmatprep.subr.bf16.mxu1 %v3079_v11 }
 0xea5   :  { %v882_v41 = vpop.f32.mrb[12].mxu1 }
 0xea6   :  { %v886_v42 = vadd.f32 %v882_v41, %v3251_v28  ;;  %v2626_v43 = vpop.f32.mrb[13].mxu1 }
 0xea8   :  { %2967 = vtanh.f32 %v886_v42  ;;  %v2415_v45 = vmul.f32 -1.442695, %v886_v42 }
 0xeaa   :  { %2969 = vpow2.f32 %v2415_v45 }
 0xeb2   :  { %v2968_v44 = vpop.eup %2967 }
 0xeb3   :  { %896 = vrot.lane.b32.xlu0 %v2968_v44, %s3082_s3 }
 0xeb4   :  { %v2970_v46 = vpop.eup %2969 }
 0xeb5   :  { %v890_v47 = vadd.f32 1.0, %v2970_v46 }
 0xeb7   :  { %2971 = vrcp.f32 %v890_v47 }
 0xec1   :  { %v2972_v48 = vpop.eup %2971 }
 0xec2   :  { %v894_v26 = vmul.f32 %v2972_v48, %v804_v37 }
 0xf25   :  { %v897_v10 = vpop.permute.xlu0 %896 }
 0xf26   :  { %v899_v49 = vmul.f32 %v2972_v48, %v897_v10 }
 0xf28   :  { %901 = vrot.lane.b32.xlu1 %v899_v49, %s3083_s18 }
 0xf9a   :  { %v902_v50 = vpop.permute.xlu1 %901 }
 0xf9b   :  { %v904_v51 = vadd.f32 %v902_v50, %v894_v26 }
 0xf9d   :  { %2973 = vtanh.f32 %v904_v51 }
 0xfa7   :  { %v2974_v28 = vpop.eup %2973 }
 0xfa8   :  { %907 = vrot.lane.b32.xlu0 %v2974_v28, %s3084_s25 }
0x101a   :  { %v908_v53 = vpop.permute.xlu0 %907 }
0x101b   :  { %v910_v54 = vmul.f32 %v2972_v48, %v908_v53 }
0x101d   :  { %912 = vrot.lane.b32.xlu1 %v910_v54, %s3085_s4 }
0x108f   :  { %v3399_v59 = vpop.permute.xlu1 %912 }
0x1090   :  { %2632 = vmatmul.mubr.msk.f32.vlgmr.msra.gmra.mrb[14].mxu0 %vm312_vm2, %v3399_v59 }
0x1091   :  { %2805 = vmatpush3.bf16.msra.mxu0 %v3397_v57  ;;  %2645 = vmatprep.mubr.msk.f32.mxu0 %vm3080_vm1, %v3081_v18 }
0x1092   :  { %2809 = vmatprep.subr.bf16.mxu0 %v3079_v11 }
0x1094   :  { %2646 = vmatmul.mubr.f32.vlgmr.msra.gmra.mrb[16].mxu0 %v3081_v18 }
0x1095   :  { %2811 = vmatpush3.bf16.msra.mxu0 %v3397_v57  ;;  %2659 = vmatprep.mubr.msk.f32.mxu0 %vm3080_vm1, %v3081_v18 }
0x1096   :  { %2815 = vmatprep.subr.bf16.mxu0 %v3079_v11 }
0x1163   :  { %v982_v61 = vpop.f32.mrb[14].mxu0 }
0x1164   :  { %v986_v63 = vadd.f32 %v982_v61, %v3257_v34  ;;  %v2633_v1 = vpop.f32.mrb[15].mxu0 }
0x1166   :  { %2975 = vtanh.f32 %v986_v63  ;;  %v2417_v15 = vmul.f32 -1.442695, %v986_v63 }
0x1167   :  { %v1179_v5 = vpop.f32.mrb[16].mxu0 }
0x1168   :  { %v1183_v8 = vadd.f32 %v1179_v5, %v307_v3  ;;  %v2647_v13 = vpop.f32.mrb[17].mxu0 }
0x116a   :  { %2977 = vtanh.f32 %v1183_v8  ;;  %v2420_v17 = vmul.f32 -1.442695, %v1183_v8 }
0x116b   :  { %2979 = vpow2.f32 %v2417_v15 }
0x116c   :  { %2981 = vpow2.f32 %v2420_v17 }
0x1170   :  { %v2976_v24 = vpop.eup %2975 }
0x1171   :  { %996 = vrot.lane.b32.xlu0 %v2976_v24, %s3082_s3 }
0x1174   :  { %v2978_v14 = vpop.eup %2977 }
0x1175   :  { %1193 = vrot.lane.b32.xlu1 %v2978_v14, %s3082_s3  ;;  %v2980_v34 = vpop.eup %2979 }
0x1176   :  { %v990_v19 = vadd.f32 1.0, %v2980_v34  ;;  %v2982_v20 = vpop.eup %2981 }
0x1177   :  { %v1187_v58 = vadd.f32 1.0, %v2982_v20 }
0x1178   :  { %2983 = vrcp.f32 %v990_v19 }
0x1179   :  { %2985 = vrcp.f32 %v1187_v58 }
0x1182   :  { %v2984_v7 = vpop.eup %2983 }
0x1183   :  { %v2986_v25 = vpop.eup %2985  ;;  %v994_v31 = vmul.f32 %v2984_v7, %v904_v51 }
0x1184   :  { %v1191_v35 = vmul.f32 0.0, %v2986_v25 }
0x11e3   :  { %v997_v22 = vpop.permute.xlu0 %996 }
0x11e4   :  { %v999_v23 = vmul.f32 %v2984_v7, %v997_v22 }
0x11e6   :  { %1001 = vrot.lane.b32.xlu0 %v999_v23, %s3083_s18 }
0x11e7   :  { %v1194_v27 = vpop.permute.xlu1 %1193 }
0x11e8   :  { %v1196_v29 = vmul.f32 %v2986_v25, %v1194_v27 }
0x11ea   :  { %1198 = vrot.lane.b32.xlu1 %v1196_v29, %s3083_s18 }
0x1258   :  { %v1002_v21 = vpop.permute.xlu0 %1001 }
0x1259   :  { %v3419_v33 = vadd.f32 %v1002_v21, %v994_v31 }
0x125b   :  { %2987 = vtanh.f32 %v3419_v33 }
0x125c   :  { %v1199_v37 = vpop.permute.xlu1 %1198 }
0x125d   :  { %v1201_v30 = vadd.f32 %v1199_v37, %v1191_v35 }
0x125f   :  { %2989 = vtanh.f32 %v1201_v30 }
0x1265   :  { %v2988_v38 = vpop.eup %2987 }
0x1266   :  { %1007 = vrot.lane.b32.xlu0 %v2988_v38, %s3084_s25 }
0x1269   :  { %v2990_v39 = vpop.eup %2989 }
0x126a   :  { %1204 = vrot.lane.b32.xlu1 %v2990_v39, %s3084_s25 }
0x12d8   :  { %v1008_v41 = vpop.permute.xlu0 %1007 }
0x12d9   :  { %v1010_v42 = vmul.f32 %v2984_v7, %v1008_v41 }
0x12db   :  { %1012 = vrot.lane.b32.xlu0 %v1010_v42, %s3085_s4 }
0x12dc   :  { %v1205_v43 = vpop.permute.xlu1 %1204 }
0x12dd   :  { %v3425_v44 = vmul.f32 %v2986_v25, %v1205_v43 }
0x12df   :  { %1209 = vrot.lane.b32.xlu1 %v3425_v44, %s3085_s4 }
0x134d   :  { %v3429_v45 = vpop.permute.xlu0 %1012 }
0x134e   :  { %2639 = vmatmul.mubr.msk.f32.vlgmr.msra.gmra.mrb[14].mxu1 %vm312_vm2, %v3429_v45 }
0x134f   :  { %2808 = vmatpush3.bf16.msra.mxu1 %v3397_v57  ;;  %2652 = vmatprep.mubr.msk.f32.mxu1 %vm3080_vm1, %v3081_v18 }
0x1350   :  { %2812 = vmatprep.subr.bf16.mxu1 %v3079_v11 }
0x1351   :  { %v1210_v46 = vpop.permute.xlu1 %1209 }
0x1352   :  { %2653 = vmatmul.mubr.msk.f32.vlgmr.msra.gmra.mrb[16].mxu1 %vm312_vm2, %v1210_v46 }
0x1353   :  { %2814 = vmatpush3.bf16.msra.mxu1 %v3397_v57  ;;  %2666 = vmatprep.mubr.msk.f32.mxu1 %vm3080_vm1, %v3081_v18 }
0x1354   :  { %2818 = vmatprep.subr.bf16.mxu1 %v3079_v11 }
0x1421   :  { %v1082_v47 = vpop.f32.mrb[14].mxu1 }
0x1422   :  { %v3443_v48 = vadd.f32 %v1082_v47, %v3255_v32  ;;  %v2640_v10 = vpop.f32.mrb[15].mxu1 }
0x1425   :  { %v1279_v49 = vpop.f32.mrb[16].mxu1 }
0x1426   :  { %v1283_v26 = vadd.f32 %v1279_v49, %v3323_v9  ;;  %v2654_v50 = vpop.f32.mrb[17].mxu1 }
0x1428   :  { %2991 = vtanh.f32 %v1283_v26  ;;  %v2422_v28 = vmul.f32 -1.442695, %v1283_v26 }
0x142a   :  { %2993 = vpow2.f32 %v2422_v28 }
0x1432   :  { %v2992_v51 = vpop.eup %2991 }
0x1433   :  { %1293 = vrot.lane.b32.xlu0 %v2992_v51, %s3082_s3 }
0x1434   :  { %v2994_v53 = vpop.eup %2993 }
0x1435   :  { %v1287_v54 = vadd.f32 1.0, %v2994_v53 }
0x1437   :  { %2995 = vrcp.f32 %v1287_v54 }
0x1441   :  { %v2996_v55 = vpop.eup %2995 }
0x1442   :  { %v1291_v32 = vmul.f32 %v2996_v55, %v1201_v30 }
0x14a5   :  { %v1294_v56 = vpop.permute.xlu0 %1293 }
0x14a6   :  { %v1296_v61 = vmul.f32 %v2996_v55, %v1294_v56 }
0x14a8   :  { %1298 = vrot.lane.b32.xlu1 %v1296_v61, %s3083_s18 }
0x151a   :  { %v1299_v63 = vpop.permute.xlu1 %1298 }
0x151b   :  { %v1301_v1 = vadd.f32 %v1299_v63, %v1291_v32 }
0x151d   :  { %2997 = vtanh.f32 %v1301_v1 }
0x1527   :  { %v2998_v9 = vpop.eup %2997 }
0x1528   :  { %1304 = vrot.lane.b32.xlu0 %v2998_v9, %s3084_s25 }
0x159a   :  { %v1305_v3 = vpop.permute.xlu0 %1304 }
0x159b   :  { %v3449_v5 = vmul.f32 %v2996_v55, %v1305_v3 }
0x159d   :  { %1309 = vrot.lane.b32.xlu1 %v3449_v5, %s3085_s4 }
0x160f   :  { %v1310_v8 = vpop.permute.xlu1 %1309 }
0x1610   :  { %2660 = vmatmul.mubr.msk.f32.vlgmr.msra.gmra.mrb[18].mxu0 %vm312_vm2, %v1310_v8 }
0x1611   :  { %2817 = vmatpush3.bf16.msra.mxu0 %v3397_v57  ;;  %2673 = vmatprep.mubr.msk.f32.mxu0 %vm3080_vm1, %v3081_v18 }
0x1612   :  { %2821 = vmatprep.subr.bf16.mxu0 %v3079_v11 }
0x16e3   :  { %v1379_v13 = vpop.f32.mrb[18].mxu0 }
0x16e4   :  { %v1383_v24 = vadd.f32 %v1379_v13, %v3315_v4  ;;  %v2661_v14 = vpop.f32.mrb[19].mxu0 }
0x16e6   :  { %2999 = vtanh.f32 %v1383_v24  ;;  %v2424_v17 = vmul.f32 -1.442695, %v1383_v24 }
0x16e8   :  { %3001 = vpow2.f32 %v2424_v17 }
0x16f0   :  { %v3000_v15 = vpop.eup %2999 }
0x16f1   :  { %1393 = vrot.lane.b32.xlu0 %v3000_v15, %s3082_s3 }
0x16f2   :  { %v3002_v34 = vpop.eup %3001 }
0x16f3   :  { %v1387_v19 = vadd.f32 1.0, %v3002_v34 }
0x16f5   :  { %3003 = vrcp.f32 %v1387_v19 }
0x16ff   :  { %v3004_v20 = vpop.eup %3003 }
0x1700   :  { %v1391_v22 = vmul.f32 %v3004_v20, %v1301_v1 }
0x1763   :  { %v1394_v58 = vpop.permute.xlu0 %1393 }
0x1764   :  { %v1396_v7 = vmul.f32 %v3004_v20, %v1394_v58 }
0x1766   :  { %1398 = vrot.lane.b32.xlu1 %v1396_v7, %s3083_s18 }
0x17d8   :  { %v1399_v23 = vpop.permute.xlu1 %1398 }
0x17d9   :  { %v1401_v25 = vadd.f32 %v1399_v23, %v1391_v22 }
0x17db   :  { %3005 = vtanh.f32 %v1401_v25 }
0x17e5   :  { %v3006_v4 = vpop.eup %3005 }
0x17e6   :  { %1404 = vrot.lane.b32.xlu0 %v3006_v4, %s3084_s25 }
0x1858   :  { %v1405_v27 = vpop.permute.xlu0 %1404 }
0x1859   :  { %v3462_v29 = vmul.f32 %v3004_v20, %v1405_v27 }
0x185b   :  { %1409 = vrot.lane.b32.xlu1 %v3462_v29, %s3085_s4 }
0x18cd   :  { %v1410_v31 = vpop.permute.xlu1 %1409 }
0x18ce   :  { %2667 = vmatmul.mubr.msk.f32.vlgmr.msra.gmra.mrb[18].mxu1 %vm312_vm2, %v1410_v31 }
0x18cf   :  { %2820 = vmatpush3.bf16.msra.mxu1 %v3397_v57  ;;  %2680 = vmatprep.mubr.msk.f32.mxu1 %vm3080_vm1, %v3081_v18 }
0x18d0   :  { %2824 = vmatprep.subr.bf16.mxu1 %v3079_v11 }
0x19a1   :  { %v1479_v21 = vpop.f32.mrb[18].mxu1 }
0x19a2   :  { %v1483_v35 = vadd.f32 %v1479_v21, %v3318_v6  ;;  %v2668_v37 = vpop.f32.mrb[19].mxu1 }
0x19a4   :  { %3007 = vtanh.f32 %v1483_v35  ;;  %v2426_v38 = vmul.f32 -1.442695, %v1483_v35 }
0x19a6   :  { %3009 = vpow2.f32 %v2426_v38 }
0x19ae   :  { %v3008_v30 = vpop.eup %3007 }
0x19af   :  { %1493 = vrot.lane.b32.xlu0 %v3008_v30, %s3082_s3 }
0x19b0   :  { %v3010_v39 = vpop.eup %3009 }
0x19b1   :  { %v1487_v41 = vadd.f32 1.0, %v3010_v39 }
0x19b3   :  { %3011 = vrcp.f32 %v1487_v41 }
0x19bd   :  { %v3012_v42 = vpop.eup %3011 }
0x19be   :  { %v1491_v47 = vmul.f32 %v3012_v42, %v1401_v25 }
0x1a21   :  { %v1494_v43 = vpop.permute.xlu0 %1493 }
0x1a22   :  { %v1496_v46 = vmul.f32 %v3012_v42, %v1494_v43 }
0x1a24   :  { %1498 = vrot.lane.b32.xlu1 %v1496_v46, %s3083_s18 }
0x1a96   :  { %v1499_v10 = vpop.permute.xlu1 %1498 }
0x1a97   :  { %v1501_v49 = vadd.f32 %v1499_v10, %v1491_v47 }
0x1a99   :  { %3013 = vtanh.f32 %v1501_v49 }
0x1aa3   :  { %v3014_v6 = vpop.eup %3013 }
0x1aa4   :  { %1504 = vrot.lane.b32.xlu0 %v3014_v6, %s3084_s25 }
0x1b16   :  { %v1505_v26 = vpop.permute.xlu0 %1504 }
0x1b17   :  { %v3475_v50 = vmul.f32 %v3012_v42, %v1505_v26 }
0x1b19   :  { %1509 = vrot.lane.b32.xlu1 %v3475_v50, %s3085_s4 }
0x1b8b   :  { %v1510_v51 = vpop.permute.xlu1 %1509 }
0x1b8c   :  { %2674 = vmatmul.mubr.msk.f32.vlgmr.msra.gmra.mrb[20].mxu0 %vm312_vm2, %v1510_v51 }
0x1b8d   :  { %2823 = vmatpush3.bf16.msra.mxu0 %v3397_v57  ;;  %2687 = vmatprep.mubr.msk.f32.mxu0 %vm3080_vm1, %v3081_v18 }
0x1b8e   :  { %2827 = vmatprep.subr.bf16.mxu0 %v3079_v11 }
0x1c5f   :  { %v1579_v28 = vpop.f32.mrb[20].mxu0 }
0x1c60   :  { %v1583_v53 = vadd.f32 %v1579_v28, %v3309_v0  ;;  %v2675_v54 = vpop.f32.mrb[21].mxu0 }
0x1c62   :  { %3015 = vtanh.f32 %v1583_v53  ;;  %v2428_v56 = vmul.f32 -1.442695, %v1583_v53 }
0x1c64   :  { %3017 = vpow2.f32 %v2428_v56 }
0x1c6c   :  { %v3016_v55 = vpop.eup %3015 }
0x1c6d   :  { %1593 = vrot.lane.b32.xlu0 %v3016_v55, %s3082_s3  ;;  %v2419_v55 = vmul.f32 -1.442695, %v3443_v48 }
0x1c6e   :  { %v3018_v61 = vpop.eup %3017 }
0x1c6f   :  { %v1587_v32 = vadd.f32 1.0, %v3018_v61 }
0x1c71   :  { %3019 = vrcp.f32 %v1587_v32 }
0x1c7b   :  { %v3020_v63 = vpop.eup %3019 }
0x1c7c   :  { %v1591_v3 = vmul.f32 %v3020_v63, %v1501_v49 }
0x1cdf   :  { %v1594_v1 = vpop.permute.xlu0 %1593 }
0x1ce0   :  { %v1596_v9 = vmul.f32 %v3020_v63, %v1594_v1 }
0x1ce2   :  { %1598 = vrot.lane.b32.xlu1 %v1596_v9, %s3083_s18 }
0x1d54   :  { %v1599_v8 = vpop.permute.xlu1 %1598 }
0x1d55   :  { %v1601_v13 = vadd.f32 %v1599_v8, %v1591_v3 }
0x1d57   :  { %3021 = vtanh.f32 %v1601_v13 }
0x1d61   :  { %v3022_v0 = vpop.eup %3021 }
0x1d62   :  { %1604 = vrot.lane.b32.xlu0 %v3022_v0, %s3084_s25 }
0x1dd4   :  { %v1605_v24 = vpop.permute.xlu0 %1604 }
0x1dd5   :  { %v3488_v14 = vmul.f32 %v3020_v63, %v1605_v24 }
0x1dd7   :  { %1609 = vrot.lane.b32.xlu1 %v3488_v14, %s3085_s4 }
0x1e49   :  { %v1610_v15 = vpop.permute.xlu1 %1609 }
0x1e4a   :  { %2681 = vmatmul.mubr.msk.f32.vlgmr.msra.gmra.mrb[20].mxu1 %vm312_vm2, %v1610_v15 }
0x1e4b   :  { %2826 = vmatpush3.bf16.msra.mxu1 %v3397_v57  ;;  %2694 = vmatprep.mubr.msk.f32.mxu1 %vm3080_vm1, %v3081_v18 }
0x1e4c   :  { %2851 = vmatprep.subr.bf16.mxu1 %v3079_v11 }
0x1f1d   :  { %v1679_v17 = vpop.f32.mrb[20].mxu1 }
0x1f1e   :  { %v1683_v34 = vadd.f32 %v1679_v17, %v3312_v2  ;;  %v2682_v19 = vpop.f32.mrb[21].mxu1 }
0x1f20   :  { %3023 = vtanh.f32 %v1683_v34  ;;  %v2430_v58 = vmul.f32 -1.442695, %v1683_v34 }
0x1f22   :  { %3025 = vpow2.f32 %v2430_v58 }
0x1f2a   :  { %v3024_v20 = vpop.eup %3023 }
0x1f2b   :  { %1693 = vrot.lane.b32.xlu0 %v3024_v20, %s3082_s3 }
0x1f2c   :  { %v3026_v7 = vpop.eup %3025 }
0x1f2d   :  { %v1687_v22 = vadd.f32 1.0, %v3026_v7 }
0x1f2f   :  { %3027 = vrcp.f32 %v1687_v22 }
0x1f39   :  { %v3028_v23 = vpop.eup %3027 }
0x1f3a   :  { %v1691_v4 = vmul.f32 %v3028_v23, %v1601_v13 }
0x1f9d   :  { %v1694_v57 = vpop.permute.xlu0 %1693 }
0x1f9e   :  { %v1696_v25 = vmul.f32 %v3028_v23, %v1694_v57 }
0x1fa0   :  { %1698 = vrot.lane.b32.xlu1 %v1696_v25, %s3083_s18 }
0x2012   :  { %v1699_v27 = vpop.permute.xlu1 %1698 }
0x2013   :  { %v1701_v31 = vadd.f32 %v1699_v27, %v1691_v4 }
0x2015   :  { %3029 = vtanh.f32 %v1701_v31 }
0x201f   :  { %v3030_v2 = vpop.eup %3029 }
0x2020   :  { %1704 = vrot.lane.b32.xlu0 %v3030_v2, %s3084_s25 }
0x2092   :  { %v1705_v21 = vpop.permute.xlu0 %1704 }
0x2093   :  { %v1707_v35 = vmul.f32 %v3028_v23, %v1705_v21 }
0x2095   :  { %1709 = vrot.lane.b32.xlu1 %v1707_v35, %s3085_s4 }
0x2107   :  { %v1710_v37 = vpop.permute.xlu1 %1709 }
0x2108   :  { %2688 = vmatmul.mubr.msk.f32.vlgmr.msra.gmra.mrb[22].mxu0 %vm312_vm2, %v1710_v37 }
0x2109   :  { %2729 = vmatprep.mubr.msk.f32.mxu0 %vm3080_vm1, %v3081_v18 }
0x21db   :  { %v1779_v30 = vpop.f32.mrb[22].mxu0 }
0x21dc   :  { %v1783_v38 = vadd.f32 %v1779_v30, %v3303_v60  ;;  %v2689_v39 = vpop.f32.mrb[23].mxu0  ;;  %v2151_v30 = vld [vmem:[%s3815_s9 + $0x18] sm:$0xff] }
0x21dd   :  { %v1953_v39 = vld [vmem:[%s3813_s7 + $0x8] sm:$0xff] }
0x21de   :  { %3031 = vtanh.f32 %v1783_v38  ;;  %v2432_v42 = vmul.f32 -1.442695, %v1783_v38  ;;  %v1952_v38 = vld [vmem:[%s3813_s7] sm:$0xff] }
0x21e0   :  { %3033 = vpow2.f32 %v2432_v42  ;;  %v1954_v42 = vld [vmem:[%s3813_s7 + $0x10] sm:$0xff] }
0x21e8   :  { %v3032_v41 = vpop.eup %3031 }
0x21e9   :  { %1793 = vrot.lane.b32.xlu0 %v3032_v41, %s3082_s3  ;;  %v2828_v41 = vpack.c.bf16 %v1953_v39, %v1952_v38 }
0x21ea   :  { %v3034_v43 = vpop.eup %3033 }
0x21eb   :  { %v1787_v46 = vadd.f32 1.0, %v3034_v43  ;;  %2829 = vmatpush3.bf16.msra.mxu0 %v2828_v41 }
0x21ec   :  { %2830 = vmatprep.subr.bf16.mxu0 %v3079_v11 }
0x21ed   :  { %3035 = vrcp.f32 %v1787_v46  ;;  %v1955_v46 = vld [vmem:[%s3813_s7 + $0x18] sm:$0xff] }
0x21f7   :  { %v3036_v47 = vpop.eup %3035 }
0x21f8   :  { %v1791_v6 = vmul.f32 %v3036_v47, %v1701_v31 }
0x225b   :  { %v1794_v10 = vpop.permute.xlu0 %1793 }
0x225c   :  { %v1796_v49 = vmul.f32 %v3036_v47, %v1794_v10  ;;  %v2153_v10 = vld [vmem:[%s3815_s9 + $0x28] sm:$0xff] }
0x225e   :  { %1798 = vrot.lane.b32.xlu1 %v1796_v49, %s3083_s18  ;;  %v2831_v49 = vpack.c.bf16 %v1955_v46, %v1954_v42 }
0x2260   :  { %2832 = vmatpush3.bf16.msra.mxu0 %v2831_v49 }
0x2261   :  { %2833 = vmatprep.subr.bf16.mxu0 %v3079_v11 }
0x22d0   :  { %v1799_v26 = vpop.permute.xlu1 %1798 }
0x22d1   :  { %v1801_v51 = vadd.f32 %v1799_v26, %v1791_v6  ;;  %v1956_v6 = vld [vmem:[%s3813_s7 + $0x20] sm:$0xff]  ;;  %v1957_v26 = vld [vmem:[%s3813_s7 + $0x28] sm:$0xff] }
0x22d3   :  { %3037 = vtanh.f32 %v1801_v51 }
0x22d4   :  { %3039 = vtanh.f32 %v3443_v48 }
0x22d5   :  { %3041 = vpow2.f32 %v2419_v55 }
0x22dd   :  { %v3038_v60 = vpop.eup %3037 }
0x22de   :  { %1804 = vrot.lane.b32.xlu0 %v3038_v60, %s3084_s25  ;;  %v3040_v54 = vpop.eup %3039  ;;  %v2154_v60 = vld [vmem:[%s3815_s9 + $0x30] sm:$0xff] }
0x22df   :  { %v3042_v56 = vpop.eup %3041 }
0x22e0   :  { %v1090_v61 = vadd.f32 1.0, %v3042_v56  ;;  %v2156_v56 = vld [vmem:[%s3815_s9 + $0x40] sm:$0xff] }
0x22e2   :  { %3043 = vrcp.f32 %v1090_v61  ;;  %v2157_v61 = vld [vmem:[%s3815_s9 + $0x48] sm:$0xff] }
0x22ec   :  { %v3514_v63 = vpop.eup %3043 }
0x22ed   :  { %v1094_v23 = vmul.f32 %v3514_v63, %v3419_v33 }
0x2350   :  { %v1805_v28 = vpop.permute.xlu0 %1804 }
0x2351   :  { %v1807_v53 = vmul.f32 %v3036_v47, %v1805_v28  ;;  %v2152_v47 = vld [vmem:[%s3815_s9 + $0x20] sm:$0xff]  ;;  %v2834_v28 = vpack.c.bf16 %v1957_v26, %v1956_v6 }
0x2353   :  { %1809 = vrot.lane.b32.xlu1 %v1807_v53, %s3085_s4  ;;  %v2902_v3 = vpack.i.bf16 %v1707_v35, %v1807_v53  ;;  %v1958_v53 = vld [vmem:[%s3813_s7 + $0x30] sm:$0xff]  ;;  %2835 = vmatpush3.bf16.msra.mxu0 %v2834_v28 }
0x2354   :  { %2836 = vmatprep.subr.bf16.mxu0 %v3079_v11 }
0x2357   :  { %1096 = vrot.lane.b32.xlu1 %v3040_v54, %s3082_s3  ;;  %v1959_v54 = vld [vmem:[%s3813_s7 + $0x38] sm:$0xff] }
0x23c5   :  { %v1810_v32 = vpop.permute.xlu1 %1809 }
0x23c6   :  { %2695 = vmatmul.mubr.msk.f32.vlgmr.msra.gmra.mrb[22].mxu1 %vm312_vm2, %v1810_v32  ;;  %v2837_v32 = vpack.c.bf16 %v1959_v54, %v1958_v53 }
0x23c8   :  { %2838 = vmatpush3.bf16.msra.mxu0 %v2837_v32 }
0x23c9   :  { %v1097_v1 = vpop.permute.xlu1 %1096  ;;  %2839 = vmatprep.subr.bf16.mxu0 %v3079_v11 }
0x23ca   :  { %v1099_v9 = vmul.f32 %v3514_v63, %v1097_v1  ;;  %v1960_v1 = vld [vmem:[%s3813_s7 + $0x40] sm:$0xff] }
0x23cc   :  { %1101 = vrot.lane.b32.xlu1 %v1099_v9, %s3083_s18  ;;  %v1961_v9 = vld [vmem:[%s3813_s7 + $0x48] sm:$0xff] }
0x23d0   :  { %2903 = vrot.lane.b32.xlu1 %v2902_v3, %s3082_s3  ;;  %v2864_v3 = vpack.c.bf16 %v2157_v61, %v2156_v56 }
0x23d4   :  { %1928 = vrot.lane.b32.xlu1 %v3475_v50, %s3082_s3 }
0x23d8   :  { %1930 = vrot.lane.b32.xlu1 %v3462_v29, %s3082_s3 }
0x243e   :  { %v1102_v48 = vpop.permute.xlu1 %1101 }
0x243f   :  { %v1104_v57 = vadd.f32 %v1102_v48, %v1094_v23  ;;  %v2158_v48 = vld [vmem:[%s3815_s9 + $0x50] sm:$0xff]  ;;  %v2164_v23 = vld [vmem:[%s3815_s9 + $0x80] sm:$0xff] }
0x2442   :  { %v2904_v8 = vpop.permute.xlu1 %2903 }
0x2443   :  { %v2906_v27 = vunpack.i.h.bf16 %v2904_v8  ;;  %v2905_v31 = vunpack.i.l.bf16 %v2904_v8  ;;  %v2159_v8 = vld [vmem:[%s3815_s9 + $0x58] sm:$0xff] }
0x2445   :  { %v3544_v2 = vsel %vm312_vm2, %v3339_v36, %v2905_v31  ;;  %v3548_v33 = vsel %vm312_vm2, %v3352_v52, %v2906_v27  ;;  %v2148_v52 = vld [vmem:[%s3815_s9] sm:$0xff]  ;;  %v1966_v27 = vld [vmem:[%s3813_s7 + $0x70] sm:$0xff]  ;;  %v1967_v31 = vld [vmem:[%s3813_s7 + $0x78] sm:$0xff] }
0x2446   :  { %v1929_v13 = vpop.permute.xlu1 %1928 }
0x2447   :  { %v3525_v0 = vsel %vm312_vm2, %v3378_v40, %v1929_v13  ;;  %v2840_v13 = vpack.c.bf16 %v1961_v9, %v1960_v1 }
0x2448   :  { %2437 = vmatprep.mubr.msk.f32.mxu1 %vm64_vm0, %v3525_v0 }
0x2449   :  { %2841 = vmatpush3.bf16.msra.mxu0 %v2840_v13 }
0x244a   :  { %v1931_v21 = vpop.permute.xlu1 %1930  ;;  %2842 = vmatprep.subr.bf16.mxu0 %v3079_v11 }
0x244b   :  { %v3556_v35 = vsel %vm312_vm2, %v3399_v59, %v1931_v21  ;;  %v2150_v59 = vld [vmem:[%s3815_s9 + $0x10] sm:$0xff] }
0x244c   :  { %v2917_v36 = vpack.i.bf16 %v3556_v35, %v3525_v0  ;;  %v2855_v43 = vpack.c.bf16 %v2151_v30, %v2150_v59  ;;  %v2166_v21 = vld [vmem:[%s3815_s9 + $0x90] sm:$0xff] }
0x2499   :  { %v1879_v24 = vpop.f32.mrb[22].mxu1 }
0x249a   :  { %v1883_v15 = vadd.f32 %v1879_v24, %v3306_v62  ;;  %v2696_v17 = vpop.f32.mrb[23].mxu1  ;;  %v1962_v24 = vld [vmem:[%s3813_s7 + $0x50] sm:$0xff] }
0x249b   :  { %v2867_v17 = vpack.c.bf16 %v2159_v8, %v2158_v48 }
0x249c   :  { %3045 = vtanh.f32 %v1883_v15  ;;  %v2434_v50 = vmul.f32 -1.442695, %v1883_v15  ;;  %v1963_v15 = vld [vmem:[%s3813_s7 + $0x58] sm:$0xff] }
0x249e   :  { %3047 = vpow2.f32 %v2434_v50  ;;  %v2161_v50 = vld [vmem:[%s3815_s9 + $0x68] sm:$0xff] }
0x24a6   :  { %v3046_v34 = vpop.eup %3045 }
0x24a7   :  { %1893 = vrot.lane.b32.xlu0 %v3046_v34, %s3082_s3  ;;  %v2160_v34 = vld [vmem:[%s3815_s9 + $0x60] sm:$0xff] }
0x24a8   :  { %v3048_v29 = vpop.eup %3047 }
0x24a9   :  { %v1887_v19 = vadd.f32 1.0, %v3048_v29  ;;  %v2843_v29 = vpack.c.bf16 %v1963_v15, %v1962_v24 }
0x24ab   :  { %3049 = vrcp.f32 %v1887_v19  ;;  %v2870_v19 = vpack.c.bf16 %v2161_v50, %v2160_v34  ;;  %2844 = vmatpush3.bf16.msra.mxu0 %v2843_v29 }
0x24ac   :  { %2845 = vmatprep.subr.bf16.mxu0 %v3079_v11 }
0x24b5   :  { %v3531_v20 = vpop.eup %3049 }
0x24b6   :  { %v1891_v7 = vmul.f32 %v3531_v20, %v1801_v51  ;;  %v2858_v51 = vpack.c.bf16 %v2153_v10, %v2152_v47 }
0x2519   :  { %v1894_v40 = vpop.permute.xlu0 %1893 }
0x251a   :  { %v1896_v58 = vmul.f32 %v3531_v20, %v1894_v40  ;;  %v2162_v40 = vld [vmem:[%s3815_s9 + $0x70] sm:$0xff] }
0x251c   :  { %1898 = vrot.lane.b32.xlu0 %v1896_v58, %s3083_s18  ;;  %s3086_s18 = smov 64   ;;  %v2163_v58 = vld [vmem:[%s3815_s9 + $0x78] sm:$0xff] }
0x258e   :  { %v1899_v62 = vpop.permute.xlu0 %1898 }
0x258f   :  { %v1901_v22 = vadd.f32 %v1899_v62, %v1891_v7  ;;  %v2873_v7 = vpack.c.bf16 %v2163_v58, %v2162_v40  ;;  %v1964_v62 = vld [vmem:[%s3813_s7 + $0x60] sm:$0xff] }
0x2591   :  { %3051 = vtanh.f32 %v1901_v22  ;;  %v1965_v22 = vld [vmem:[%s3813_s7 + $0x68] sm:$0xff] }
0x2592   :  { %3053 = vtanh.f32 %v1104_v57  ;;  %v2846_v57 = vpack.c.bf16 %v1965_v22, %v1964_v62  ;;  %v2284_v62 = vld [vmem:[%s3817_s11] sm:$0xff]  ;;  %v2285_v22 = vld [vmem:[%s3817_s11 + $0x8] sm:$0xff] }
0x2594   :  { %2847 = vmatpush3.bf16.msra.mxu0 %v2846_v57 }
0x2595   :  { %2848 = vmatprep.subr.bf16.mxu0 %v3079_v11 }
0x259b   :  { %v3052_v25 = vpop.eup %3051 }
0x259c   :  { %1904 = vrot.lane.b32.xlu0 %v3052_v25, %s3084_s25  ;;  %v3054_v4 = vpop.eup %3053  ;;  %v2165_v25 = vld [vmem:[%s3815_s9 + $0x88] sm:$0xff] }
0x25a0   :  { %1926 = vrot.lane.b32.xlu0 %v3488_v14, %s3082_s3  ;;  %v2907_v14 = vpack.i.bf16 %v3548_v33, %v3544_v2 }
0x25a4   :  { %1107 = vrot.lane.b32.xlu0 %v3054_v4, %s3084_s25  ;;  %v2876_v4 = vpack.c.bf16 %v2165_v25, %v2164_v23  ;;  %v2882_v23 = vpack.c.bf16 %v2285_v22, %v2284_v62  ;;  %v2436_v25 = vld [vmem:[%s3816_s10] ss:$0 sm:$0xff] }
0x25a8   :  { %1932 = vrot.lane.b32.xlu0 %v3449_v5, %s3082_s3  ;;  %v2149_v5 = vld [vmem:[%s3815_s9 + $0x8] sm:$0xff] }
0x25a9   :  { %v2852_v37 = vpack.c.bf16 %v2149_v5, %v2148_v52  ;;  %v2167_v52 = vld [vmem:[%s3815_s9 + $0x98] sm:$0xff] }
0x25aa   :  { %v2879_v5 = vpack.c.bf16 %v2167_v52, %v2166_v21  ;;  %v2291_v52 = vld [vmem:[%s3817_s11 + $0x38] sm:$0xff] }
0x25ab   :  { %2853 = vmatpush1.bf16.msra.mxu1 %v2852_v37 }
0x25ac   :  { %2908 = vrot.lane.b32.xlu0 %v2907_v14, %s3084_s25  ;;  %2854 = vmatprep.subr.bf16.mxu1 %v3079_v11 }
0x25af   :  { %2856 = vmatpush1.bf16.msra.mxu1 %v2855_v43 }
0x25b0   :  { %2918 = vrot.lane.b32.xlu0 %v2917_v36, %s3082_s3  ;;  %2857 = vmatprep.subr.bf16.mxu1 %v3079_v11  ;;  %v2849_v36 = vpack.c.bf16 %v1967_v31, %v1966_v27  ;;  %v2289_v27 = vld [vmem:[%s3817_s11 + $0x28] sm:$0xff] }
0x25b2   :  { %2850 = vmatpush3.bf16.msra.mxu0 %v2849_v36  ;;  %v2290_v36 = vld [vmem:[%s3817_s11 + $0x30] sm:$0xff] }
0x25b3   :  { %2859 = vmatpush1.bf16.msra.mxu1 %v2858_v51  ;;  %2881 = vmatprep.subr.bf16.mxu0 %v3079_v11 }
0x25b4   :  { %1994 = vrot.lane.b32.xlu0 %v3525_v0, %s3086_s18  ;;  %2860 = vmatprep.subr.bf16.mxu1 %v3079_v11 }
0x25b8   :  { %1934 = vrot.lane.b32.xlu0 %v3425_v44, %s3082_s3  ;;  %v2155_v44 = vld [vmem:[%s3815_s9 + $0x38] sm:$0xff] }
0x25b9   :  { %v2861_v55 = vpack.c.bf16 %v2155_v44, %v2154_v60 }
0x25bb   :  { %2862 = vmatpush1.bf16.msra.mxu1 %v2861_v55 }
0x25bc   :  { %1996 = vrot.lane.b32.xlu0 %v3556_v35, %s3086_s18  ;;  %2863 = vmatprep.subr.bf16.mxu1 %v3079_v11 }
0x25bf   :  { %2865 = vmatpush1.bf16.msra.mxu1 %v2864_v3 }
0x25c0   :  { %1982 = vrot.lane.b32.xlu0 %v3556_v35, %s3084_s25  ;;  %2866 = vmatprep.subr.bf16.mxu1 %v3079_v11 }
0x25c3   :  { %2868 = vmatpush1.bf16.msra.mxu1 %v2867_v17 }
0x25c4   :  { %2869 = vmatprep.subr.bf16.mxu1 %v3079_v11 }
0x25c7   :  { %2871 = vmatpush1.bf16.msra.mxu1 %v2870_v19 }
0x25c8   :  { %2872 = vmatprep.subr.bf16.mxu1 %v3079_v11 }
0x25cb   :  { %2874 = vmatpush1.bf16.msra.mxu1 %v2873_v7 }
0x25cc   :  { %2875 = vmatprep.subr.bf16.mxu1 %v3079_v11 }
0x25cf   :  { %2877 = vmatpush1.bf16.msra.mxu1 %v2876_v4  ;;  %v2288_v4 = vld [vmem:[%s3817_s11 + $0x20] sm:$0xff] }
0x25d0   :  { %2878 = vmatprep.subr.bf16.mxu1 %v3079_v11 }
0x25d3   :  { %2880 = vmatpush1.bf16.msra.mxu1 %v2879_v5 }
0x260e   :  { %v1905_v14 = vpop.permute.xlu0 %1904 }
0x260f   :  { %v1907_v38 = vmul.f32 %v3531_v20, %v1905_v14  ;;  %v2888_v14 = vpack.c.bf16 %v2289_v27, %v2288_v4 }
0x2612   :  { %v1927_v59 = vpop.permute.xlu0 %1926 }
0x2613   :  { %v1947_v37 = vsel %vm312_vm2, %v3365_v16, %v1927_v59 }
0x2614   :  { %v2912_v30 = vpack.i.bf16 %v1947_v37, %v3548_v33  ;;  %v2922_v39 = vpack.i.bf16 %v1947_v37, %v1907_v38 }
0x2616   :  { %2913 = vrot.lane.b32.xlu1 %v2912_v30, %s3086_s18  ;;  %v1108_v41 = vpop.permute.xlu0 %1107  ;;  %v2891_v30 = vpack.c.bf16 %v2291_v52, %v2290_v36 }
0x2617   :  { %v1110_v42 = vmul.f32 %v3514_v63, %v1108_v41 }
0x261a   :  { %2923 = vrot.lane.b32.xlu1 %v2922_v39, %s3082_s3  ;;  %v1933_v43 = vpop.permute.xlu0 %1932 }
0x261b   :  { %v1950_v16 = vsel %vm312_vm2, %v3429_v45, %v1933_v43 }
0x261e   :  { %1978 = vrot.lane.b32.xlu1 %v1947_v37, %s3084_s25  ;;  %v2909_v20 = vpop.permute.xlu0 %2908 }
0x261f   :  { %v2911_v6 = vunpack.i.h.bf16 %v2909_v20  ;;  %v2910_v63 = vunpack.i.l.bf16 %v2909_v20 }
0x2621   :  { %v2022_v56 = vsel %vm64_vm0, %v3544_v2, %v2911_v6 }
0x2622   :  { %1909 = vrot.lane.b32.xlu1 %v1110_v42, %s3085_s4  ;;  %v2919_v46 = vpop.permute.xlu0 %2918 }
0x2623   :  { %v2920_v32 = vunpack.i.l.bf16 %v2919_v46  ;;  %v2921_v8 = vunpack.i.h.bf16 %v2919_v46  ;;  %v2435_v46 = vld [vmem:[%s3814_s8] ss:$0 sm:$0xff] }
0x2626   :  { %1980 = vrot.lane.b32.xlu1 %v3525_v0, %s3084_s25  ;;  %v1995_v26 = vpop.permute.xlu0 %1994 }
0x262a   :  { %2012 = vrot.lane.b32.xlu1 %v1950_v16, %s3082_s3  ;;  %v1935_v1 = vpop.permute.xlu0 %1934 }
0x262e   :  { %1998 = vrot.lane.b32.xlu1 %v1950_v16, %s3086_s18  ;;  %v1997_v24 = vpop.permute.xlu0 %1996 }
0x2632   :  { %v1983_v50 = vpop.permute.xlu0 %1982 }
0x2633   :  { %v2025_v19 = vsel %vm64_vm0, %v3525_v0, %v1983_v50  ;;  %v2286_v0 = vld [vmem:[%s3817_s11 + $0x10] sm:$0xff] }
0x2688   :  { %v2914_v47 = vpop.permute.xlu1 %2913 }
0x2689   :  { %v2916_v51 = vunpack.i.h.bf16 %v2914_v47  ;;  %v2915_v60 = vunpack.i.l.bf16 %v2914_v47 }
0x268b   :  { %v2028_v61 = vsel %vm2026_vm3, %v2022_v56, %v2916_v51 }
0x268c   :  { %v2924_v10 = vpop.permute.xlu1 %2923  ;;  %v2034_v2 = vsel %vm2032_vm4, %v2028_v61, %v2920_v32 }
0x268d   :  { %v2925_v49 = vunpack.i.l.bf16 %v2924_v10  ;;  %v2926_v28 = vunpack.i.h.bf16 %v2924_v10 }
0x268f   :  { %v1944_v44 = vsel %vm312_vm2, %v3325_v12, %v2925_v49 }
0x2690   :  { %v1979_v53 = vpop.permute.xlu1 %1978  ;;  %v2021_v45 = vsel %vm64_vm0, %v1944_v44, %v2910_v63 }
0x2691   :  { %v2027_v54 = vsel %vm2026_vm3, %v2021_v45, %v2915_v60  ;;  %v2023_v12 = vsel %vm64_vm0, %v3548_v33, %v1979_v53 }
0x2692   :  { %v2033_v55 = vsel %vm2032_vm4, %v2027_v54, %v2926_v28  ;;  %v2029_v48 = vsel %vm2026_vm3, %v2023_v12, %v1995_v26 }
0x2693   :  { %2730 = vmatmul.mubr.f32.vlgmr.msra.gmra.mrb[24].mxu0 %v2033_v55  ;;  %2248 = vmatmul.mubr.f32.vlgmr.msra.gmra.mrb[24].mxu1 %v2033_v55 }
0x2694   :  { %v1910_v9 = vpop.permute.xlu1 %1909  ;;  %2438 = vmatprep.mubr.msk.f32.mxu1 %vm64_vm0, %v3556_v35  ;;  %2732 = vmatprep.mubr.msk.f32.mxu0 %vm3080_vm1, %v3081_v18  ;;  %v2035_v35 = vsel %vm2032_vm4, %v2029_v48, %v2921_v8 }
0x2695   :  { %v1951_v3 = vsel %vm312_vm2, %v1910_v9, %v1935_v1  ;;  %2883 = vmatpush3.bf16.msra.mxu0 %v2882_v23 }
0x2696   :  { %2014 = vrot.lane.b32.xlu0 %v1951_v3, %s3082_s3  ;;  %2884 = vmatprep.subr.bf16.mxu0 %v3079_v11 }
0x2697   :  { %2733 = vmatmul.mubr.f32.gmra.mrb[26].mxu0 %v2034_v2  ;;  %2253 = vmatmul.mubr.f32.gmra.mrb[26].mxu1 %v2034_v2 }
0x2698   :  { %v1981_v13 = vpop.permute.xlu1 %1980  ;;  %2439 = vmatprep.mubr.msk.f32.mxu1 %vm64_vm0, %v1950_v16  ;;  %2735 = vmatprep.mubr.msk.f32.mxu0 %vm3080_vm1, %v3081_v18 }
0x2699   :  { %v2024_v33 = vsel %vm64_vm0, %v1947_v37, %v1981_v13 }
0x269a   :  { %v2030_v17 = vsel %vm2026_vm3, %v2024_v33, %v1997_v24 }
0x269b   :  { %2736 = vmatmul.mubr.f32.gmra.mrb[28].mxu0 %v2035_v35  ;;  %2258 = vmatmul.mubr.f32.gmra.mrb[28].mxu1 %v2035_v35 }
0x269c   :  { %v2013_v15 = vpop.permute.xlu1 %2012  ;;  %2440 = vmatprep.mubr.msk.f32.mxu1 %vm64_vm0, %v1951_v3  ;;  %2738 = vmatprep.mubr.msk.f32.mxu0 %vm3080_vm1, %v3081_v18 }
0x269d   :  { %v2036_v34 = vsel %vm2032_vm4, %v2030_v17, %v2013_v15 }
0x269f   :  { %2739 = vmatmul.mubr.f32.gmra.mrb[30].mxu0 %v2036_v34  ;;  %2263 = vmatmul.mubr.f32.gmra.mrb[30].mxu1 %v2036_v34 }
0x26a0   :  { %2741 = vmatprep.mubr.msk.f32.mxu0 %vm3080_vm1, %v3081_v18  ;;  %v1999_v29 = vpop.permute.xlu1 %1998 }
0x26a1   :  { %v2031_v40 = vsel %vm2026_vm3, %v2025_v19, %v1999_v29 }
0x2708   :  { %v2015_v58 = vpop.permute.xlu0 %2014 }
0x2709   :  { %v2037_v7 = vsel %vm2032_vm4, %v2031_v40, %v2015_v58 }
0x270a   :  { %2742 = vmatmul.mubr.f32.gmra.mrb[32].mxu0 %v2037_v7 }
0x270b   :  { %2760 = vmatprep.mubr.msk.f32.mxu0 %vm3080_vm1, %v3081_v18  ;;  %v2287_v18 = vld [vmem:[%s3817_s11 + $0x18] sm:$0xff] }
0x270c   :  { %v2885_v57 = vpack.c.bf16 %v2287_v18, %v2286_v0  ;;  %v2441_v18 = vld [vmem:[%s3818_s12] ss:$0 sm:$0xff] }
0x270e   :  { %2886 = vmatpush3.bf16.msra.mxu0 %v2885_v57 }
0x270f   :  { %2887 = vmatprep.subr.bf16.mxu0 %v3079_v11 }
0x2712   :  { %2889 = vmatpush3.bf16.msra.mxu0 %v2888_v14 }
0x2713   :  { %2890 = vmatprep.subr.bf16.mxu0 %v3079_v11 }
0x2716   :  { %2892 = vmatpush3.bf16.msra.mxu0 %v2891_v30 }
0x2766   :  { %v2110_v31 = vpop.f32.mrb[24].mxu0  ;;  %v2249_v21 = vpop.f32.mrb[24].mxu1 }
0x2767   :  { %v2250_v5 = vadd.f32 %v2436_v25, %v2249_v21  ;;  %v2731_v59 = vpop.f32.mrb[25].mxu0  ;;  %v2251_v37 = vpop.f32.mrb[25].mxu1  ;;  %v2111_v33 = vadd.f32 %v2435_v46, %v2110_v31 }
0x2769   :  { %v2268_v41 = vmax.f32 %v2250_v5, 0.0  ;;  %v2134_v15 = vmax.f32 %v2111_v33, 0.0 }
0x276a   :  { %v2115_v38 = vpop.f32.mrb[26].mxu0  ;;  %v2254_v39 = vpop.f32.mrb[26].mxu1 }
0x276b   :  { %v2255_v42 = vadd.f32 %v2436_v25, %v2254_v39  ;;  %v2734_v43 = vpop.f32.mrb[27].mxu0  ;;  %v2256_v16 = vpop.f32.mrb[27].mxu1  ;;  %v2272_v49 = vsel %vm64_vm0, %v2268_v41, -inf  ;;  %v2116_v35 = vadd.f32 %v2435_v46, %v2115_v38  ;;  %v2139_v19 = vsel %vm64_vm0, %v2134_v15, -inf }
0x276d   :  { %v2269_v20 = vmax.f32 %v2255_v42, 0.0  ;;  %v2135_v50 = vmax.f32 %v2116_v35, 0.0 }
0x276e   :  { %v2120_v47 = vpop.f32.mrb[28].mxu0  ;;  %v2259_v10 = vpop.f32.mrb[28].mxu1 }
0x276f   :  { %v2273_v6 = vsel %vm64_vm0, %v2269_v20, -inf  ;;  %v2121_v63 = vadd.f32 %v2435_v46, %v2120_v47  ;;  %v2260_v26 = vadd.f32 %v2436_v25, %v2259_v10  ;;  %v2737_v51 = vpop.f32.mrb[29].mxu0  ;;  %v2261_v11 = vpop.f32.mrb[29].mxu1  ;;  %v2140_v7 = vsel %vm64_vm0, %v2135_v50, -inf }
0x2770   :  { %v2276_v60 = vmax.f32 %v2272_v49, %v2273_v6 }
0x2771   :  { %v2136_v53 = vmax.f32 %v2121_v63, 0.0  ;;  %v2270_v45 = vmax.f32 %v2260_v26, 0.0 }
0x2772   :  { %v2125_v44 = vpop.f32.mrb[30].mxu0  ;;  %v2264_v28 = vpop.f32.mrb[30].mxu1 }
0x2773   :  { %v2126_v54 = vadd.f32 %v2435_v46, %v2125_v44  ;;  %v2265_v55 = vadd.f32 %v2436_v25, %v2264_v28  ;;  %v2740_v56 = vpop.f32.mrb[31].mxu0  ;;  %v2266_v61 = vpop.f32.mrb[31].mxu1  ;;  %v2141_v12 = vsel %vm64_vm0, %v2136_v53, -inf  ;;  %v2274_v9 = vsel %vm64_vm0, %v2270_v45, -inf }
0x2775   :  { %v2137_v32 = vmax.f32 %v2126_v54, 0.0  ;;  %v2271_v1 = vmax.f32 %v2265_v55, 0.0 }
0x2777   :  { %v2142_v3 = vsel %vm64_vm0, %v2137_v32, -inf  ;;  %v2275_v2 = vsel %vm64_vm0, %v2271_v1, -inf }
0x2778   :  { %v2146_v48 = vmax.f32 %v2141_v12, %v2142_v3  ;;  %v2277_v8 = vmax.f32 %v2274_v9, %v2275_v2 }
0x277a   :  { %v2278_v13 = vmax.f32 %v2276_v60, %v2277_v8 }
0x277c   :  { %2280 = vrot.lane.b32.xlu1 %v2278_v13, %s3084_s25  ;;  %s3087_s25 = smov [#allocation2]  }
0x277d   :  { %s2379_s19 = sshll.u32 %s3087_s25, 4  ;;  %s2380_s19 = int_to_ptr.vmem [resolvable:$true] %s2379_s19 }
0x277e   :  { %s3055_s20 = scalar_lea.vmem %s2380_s19, 128  ;;  %p3060_p1 = scmp.lt.s32.totalorder %s2380_s19, %s2380_s19 }
0x277f   :  { %p3056_p0 = scmp.ne.s32.totalorder %s2380_s19, %s3055_s20  ;;  %p3061_p2 = scmp.lt.s32.totalorder %s3055_s20, %s3055_s20 }
0x2781   :  { %p3062_p3 = por %p3061_p2, %p3060_p1 }
0x2783   :  { %p3063_p4 = pnand %p3062_p3, %p3056_p0 }
0x27dd   :  { %v2130_v24 = vpop.f32.mrb[32].mxu0 }
0x27de   :  { %v2131_v17 = vadd.f32 %v2435_v46, %v2130_v24  ;;  %v2743_v34 = vpop.f32.mrb[33].mxu0 }
0x27e0   :  { %v2138_v29 = vmax.f32 %v2131_v17, 0.0 }
0x27e2   :  { %v2143_v40 = vsel %vm64_vm0, %v2138_v29, -inf }
0x27e3   :  { %v2144_v58 = vmax.f32 %v2139_v19, %v2143_v40 }
0x27e5   :  { %v2145_v62 = vmax.f32 %v2144_v58, %v2140_v7 }
0x27e7   :  { %v2147_v22 = vmax.f32 %v2145_v62, %v2146_v48 }
0x27ee   :  { %v2281_v23 = vpop.permute.xlu1 %2280 }
0x27ef   :  { %v2283_v0 = vsel %vm64_vm0, %v2147_v22, %v2281_v23 }
0x27f0   :  { %2761 = vmatmul.mubr.msk.f32.vlgmr.msra.gmra.mrb[34].mxu0 %vm2026_vm3, %v2283_v0 }
0x28c3   :  { %v2368_v57 = vpop.f32.mrb[34].mxu0 }
0x28c4   :  { %v2369_v25 = vadd.f32 %v2441_v18, %v2368_v57  ;;  %v2762_v4 = vpop.f32.mrb[35].mxu0 }
0x28c6   :  { %2372 = vst [vmem:[#allocation2] sm:$0xff] %v2369_v25 }
0x28c7   :  { %3066 = shalt.err (!%p3063_p4)
}
0x28c8   :  { %s3067_s22 = scalar_lea.hbm %s3819_s13, 128 }
0x28c9   :  { %p3068_p5 = scmp.ne.s32.totalorder %s3819_s13, %s3067_s22  ;;  %p3071_p6 = scmp.lt.u32.totalorder %s3067_s22, %s3819_s13 }
0x28cb   :  { %p3073_p7 = pnand %p3071_p6, %p3068_p5 }
0x28cd   :  { %3076 = shalt.err (!%p3073_p7)
}
0x28ce   :  { %2382 = dma.vmem_to_hbm [thread:$0]  %s2380_s19, 128, %s3819_s13, [#allocation3]  }
0x28cf   :  { %3077 = dma.done.wait [#allocation3], 128  }
0x28d0   :  { %3078 = vsyncadd [#allocation3], 4294967168 }
0x28d1   :  { %2386 = vsyncpa [#allocation3], 1 }

</bundles_post_ra>
